<compile_context>
chip_gen: v7x
topology: tpu7x:2x2x1
jax: 0.10.0
libtpu: 0.0.40
codegen_flags: <defaults>
</compile_context>

<pallas_src>
import jax
import jax.numpy as jnp
import numpy as np
from jax import lax
from jax.experimental import pallas as pl
from jax.experimental.pallas import tpu as pltpu

K = 7      # kernel_size
PAD = 3    # padding for kernel_size == 7


def _make_kernel(NB, C, H, W, Hp, OFF, LW):
    def kernel(wvec_ref, x_ref, o_ref, packed_ref):
        # wvec_ref  : VMEM (K*K, 1, LW) f32 — per-tap lane-weight rows
        #             (avg-channel weight in lanes [0,OFF), max-channel weight
        #             in lanes [OFF,LW)).
        # x_ref     : VMEM (NB, C, H, W) — input block.
        # o_ref     : VMEM (NB, H, LW)   — lane-dense output slab.
        # packed_ref: VMEM (NB, Hp, LW) f32 scratch — zero-padded avg|max map
        #             packed side by side along the lane dimension.
        xf = x_ref[...].astype(jnp.float32)              # (NB, C, H, W)
        avg = jnp.mean(xf, axis=1)                       # (NB, H, W)
        mx = jnp.max(xf, axis=1)                         # (NB, H, W)

        # Single packed, zero-padded working map (zero border == PyTorch's
        # zero-padded conv over the concatenated [avg, max] map).
        packed_ref[...] = jnp.zeros_like(packed_ref)
        packed_ref[:, PAD:PAD + H, PAD:PAD + W] = avg
        packed_ref[:, PAD:PAD + H, OFF + PAD:OFF + PAD + W] = mx

        # 7x7 conv as shift-and-accumulate on the packed map.  For each kh the
        # H-row band is loaded once from scratch; the kw lane shift is ONE
        # incremental roll per tap (XLU slot, otherwise idle).  Lane j
        # accumulates the avg-channel contribution, lane OFF+j the max-channel
        # contribution.
        acc = jnp.zeros((NB, H, LW), jnp.float32)
        for kh in range(K):
            cur = packed_ref[:, kh:kh + H, :]            # (NB, H, LW)
            for kw in range(K):
                if kw > 0:
                    # cur[..., j] <- packed[..., j + kw]; the circular wrap
                    # only touches lanes >= LW-(K-1), which are never read.
                    cur = pltpu.roll(cur, shift=LW - 1, axis=2)
                acc = acc + wvec_ref[kh * K + kw] * cur

        # Fold the max-channel lanes onto the avg-channel lanes:
        # total[..., j] = acc[..., j] + acc[..., j + OFF]   for j < W.
        acc = acc + pltpu.roll(acc, shift=LW - OFF, axis=2)
        o_ref[...] = jax.nn.sigmoid(acc).astype(o_ref.dtype)

    return kernel


def spatial_attention(x, conv_w, *, batch_block=1):
    """x: (N, C, H, W), conv_w: (1, 2, K, K) -> sigmoid(conv7x7([mean_c, max_c]))."""
    N, C, H, W = x.shape
    Hp = H + 2 * PAD
    Wp = W + 2 * PAD
    LW = ((Wp + 127) // 128) * 128          # lane-dense padded width
    OFF = ((Wp + 7) // 8) * 8               # lane offset of the packed max map
    # Single-slab packing requires: avg reads (lanes [0, Wp)) stay left of OFF,
    # and max reads (lanes [OFF, OFF+Wp)) stay clear of the circular-wrap
    # garbage lanes [LW-(K-1), LW).
    assert OFF >= Wp and OFF + Wp + (K - 1) <= LW, "W too large for single-slab packing"
    # TODO(synk): for W >~ 54 fall back to two separate 128-lane slabs.

    NB = batch_block
    assert N % NB == 0, "batch_block must divide N"

    # Per-tap lane-weight rows: channel-0 (avg) weight in lanes [0, OFF),
    # channel-1 (max) weight in lanes [OFF, LW).
    w = conv_w.reshape(2, K * K).astype(jnp.float32)
    lane = jnp.arange(LW)
    wvec = jnp.where(lane[None, :] < OFF, w[0][:, None], w[1][:, None])
    wvec = wvec.reshape(K * K, 1, LW)

    itemsize = x.dtype.itemsize
    cost = pl.CostEstimate(
        flops=2 * 2 * K * K * N * H * W + 2 * N * C * H * W,
        transcendentals=N * H * W,
        bytes_accessed=x.size * itemsize + N * H * LW * itemsize + wvec.size * 4,
    )

    kernel = _make_kernel(NB, C, H, W, Hp, OFF, LW)
    out_slab = pl.pallas_call(
        kernel,
        out_shape=jax.ShapeDtypeStruct((N, H, LW), x.dtype),
        grid=(N // NB,),
        in_specs=[
            pl.BlockSpec((K * K, 1, LW), lambda b: (0, 0, 0)),       # weights
            pl.BlockSpec((NB, C, H, W), lambda b: (b, 0, 0, 0)),     # x block
        ],
        out_specs=pl.BlockSpec((NB, H, LW), lambda b: (b, 0, 0)),
        scratch_shapes=[
            pltpu.VMEM((NB, Hp, LW), jnp.float32),   # packed padded avg|max map
        ],
        compiler_params=pltpu.CompilerParams(
            dimension_semantics=("parallel",),        # batch blocks independent
            vmem_limit_bytes=32 * 1024 * 1024,
        ),
        cost_estimate=cost,
    )(wvec, x)
    # Kernel stores lane-dense; slice the W valid lanes and restore NCHW here.
    return out_slab[:, :, :W].reshape(N, 1, H, W)


def spatial_attention_ref(x, conv_w):
    """Pure-JAX reference (mirrors the PyTorch forward)."""
    avg = jnp.mean(x, axis=1, keepdims=True)
    mx = jnp.max(x, axis=1, keepdims=True)
    cat = jnp.concatenate([avg, mx], axis=1)
    y = lax.conv_general_dilated(
        cat, conv_w, window_strides=(1, 1),
        padding=((PAD, PAD), (PAD, PAD)),
        dimension_numbers=('NCHW', 'OIHW', 'NCHW'))
    return jax.nn.sigmoid(y)


if __name__ == "__main__":
    key = jax.random.PRNGKey(0)
    kx, kparam = jax.random.split(key)

    N, C, H, W = 2, 4, 16, 16
    x = jax.random.normal(kx, (N, C, H, W), dtype=jnp.float32)
    # deterministic synthetic weight for nn.Conv2d(2, 1, 7, bias=False)
    conv_w = jax.random.normal(kparam, (1, 2, K, K), dtype=jnp.float32) * 0.1

    out = jax.block_until_ready(spatial_attention(x, conv_w))
    ref = jax.block_until_ready(spatial_attention_ref(x, conv_w))

    assert out.shape == (N, 1, H, W)
    np.testing.assert_allclose(np.asarray(out), np.asarray(ref),
                               rtol=1e-5, atol=1e-5)
    print("KERNEL_OK")
</pallas_src>

<mosaic_0001>
module attributes {stable_mosaic.version = 11 : i64} {
  func.func @kernel(%arg0: i32, %arg1: memref<49x1x128xf32, #tpu.memory_space<vmem>>, %arg2: memref<1x4x16x16xf32, #tpu.memory_space<vmem>>, %arg3: memref<1x16x128xf32, #tpu.memory_space<vmem>>, %arg4: memref<1x22x128xf32, #tpu.memory_space<vmem>>) attributes {dimension_semantics = [#tpu.dimension_semantics<parallel>], iteration_bounds = array<i64: 2>, scalar_prefetch = 0 : i64, scratch_operands = 1 : i64, tpu.core_type = #tpu.core_type<tc>, window_params = [{pipeline_mode = #tpu.pipeline_mode<synchronous>, transform_indices = @transform_0, window_bounds = array<i64: 49, 1, 128>}, {transform_indices = @transform_1, window_bounds = array<i64: 1, 4, 16, 16>}, {transform_indices = @transform_2, window_bounds = array<i64: 1, 16, 128>}]} {
    %c0 = arith.constant 0 : index
    %c0_0 = arith.constant 0 : index
    %c0_1 = arith.constant 0 : index
    %c0_2 = arith.constant 0 : index
    %0 = vector.load %arg2[%c0, %c0_0, %c0_1, %c0_2] : memref<1x4x16x16xf32, #tpu.memory_space<vmem>>, vector<1x4x16x16xf32>
    %cst = arith.constant dense<0.000000e+00> : vector<1x16x16xf32>
    %1 = vector.multi_reduction <add>, %0, %cst [1] : vector<1x4x16x16xf32> to vector<1x16x16xf32>
    %cst_3 = arith.constant 4.000000e+00 : f32
    %2 = vector.broadcast %cst_3 : f32 to vector<1x16x16xf32>
    %3 = arith.divf %1, %2 : vector<1x16x16xf32>
    %cst_4 = arith.constant dense<0xFF800000> : vector<1x16x16xf32>
    %4 = vector.multi_reduction <maximumf>, %0, %cst_4 [1] : vector<1x4x16x16xf32> to vector<1x16x16xf32>
    %cst_5 = arith.constant 0.000000e+00 : f32
    %5 = vector.broadcast %cst_5 : f32 to vector<1x22x128xf32>
    %c0_6 = arith.constant 0 : index
    %c0_7 = arith.constant 0 : index
    %c0_8 = arith.constant 0 : index
    %6 = vector.load %arg4[%c0_6, %c0_7, %c0_8] : memref<1x22x128xf32, #tpu.memory_space<vmem>>, vector<1x22x128xf32>
    tpu.vector_store %arg4[%c0_6, %c0_7, %c0_8], %5 {strides = array<i32>} : memref<1x22x128xf32, #tpu.memory_space<vmem>>, vector<1x22x128xf32>,
    %c0_9 = arith.constant 0 : index
    %c3 = arith.constant 3 : index
    %c3_10 = arith.constant 3 : index
    %7 = vector.load %arg4[%c0_9, %c3, %c3_10] : memref<1x22x128xf32, #tpu.memory_space<vmem>>, vector<1x16x16xf32>
    tpu.vector_store %arg4[%c0_9, %c3, %c3_10], %3 {strides = array<i32>} : memref<1x22x128xf32, #tpu.memory_space<vmem>>, vector<1x16x16xf32>,
    %c0_11 = arith.constant 0 : index
    %c3_12 = arith.constant 3 : index
    %c27 = arith.constant 27 : index
    %8 = vector.load %arg4[%c0_11, %c3_12, %c27] : memref<1x22x128xf32, #tpu.memory_space<vmem>>, vector<1x16x16xf32>
    tpu.vector_store %arg4[%c0_11, %c3_12, %c27], %4 {strides = array<i32>} : memref<1x22x128xf32, #tpu.memory_space<vmem>>, vector<1x16x16xf32>,
    %cst_13 = arith.constant 0.000000e+00 : f32
    %9 = vector.broadcast %cst_13 : f32 to vector<1x16x128xf32>
    %c0_14 = arith.constant 0 : index
    %c0_15 = arith.constant 0 : index
    %c0_16 = arith.constant 0 : index
    %10 = vector.load %arg4[%c0_14, %c0_15, %c0_16] : memref<1x22x128xf32, #tpu.memory_space<vmem>>, vector<1x16x128xf32>
    %c0_17 = arith.constant 0 : index
    %c0_18 = arith.constant 0 : index
    %c0_19 = arith.constant 0 : index
    %11 = vector.load %arg1[%c0_17, %c0_18, %c0_19] : memref<49x1x128xf32, #tpu.memory_space<vmem>>, vector<1x1x128xf32>
    %12 = vector.shape_cast %11 : vector<1x1x128xf32> to vector<1x128xf32>
    %13 = vector.shape_cast %12 : vector<1x128xf32> to vector<1x1x128xf32>
    %14 = vector.broadcast %13 : vector<1x1x128xf32> to vector<1x16x128xf32>
    %15 = arith.mulf %14, %10 : vector<1x16x128xf32>
    %16 = arith.addf %9, %15 : vector<1x16x128xf32>
    %c127_i32 = arith.constant 127 : i32
    %17 = tpu.dynamic_rotate %10 by %c127_i32 dim 2 : vector<1x16x128xf32>, i32 -> vector<1x16x128xf32>
    %c1 = arith.constant 1 : index
    %c0_20 = arith.constant 0 : index
    %c0_21 = arith.constant 0 : index
    %18 = vector.load %arg1[%c1, %c0_20, %c0_21] : memref<49x1x128xf32, #tpu.memory_space<vmem>>, vector<1x1x128xf32>
    %19 = vector.shape_cast %18 : vector<1x1x128xf32> to vector<1x128xf32>
    %20 = vector.shape_cast %19 : vector<1x128xf32> to vector<1x1x128xf32>
    %21 = vector.broadcast %20 : vector<1x1x128xf32> to vector<1x16x128xf32>
    %22 = arith.mulf %21, %17 : vector<1x16x128xf32>
    %23 = arith.addf %16, %22 : vector<1x16x128xf32>
    %c127_i32_22 = arith.constant 127 : i32
    %24 = tpu.dynamic_rotate %17 by %c127_i32_22 dim 2 : vector<1x16x128xf32>, i32 -> vector<1x16x128xf32>
    %c2 = arith.constant 2 : index
    %c0_23 = arith.constant 0 : index
    %c0_24 = arith.constant 0 : index
    %25 = vector.load %arg1[%c2, %c0_23, %c0_24] : memref<49x1x128xf32, #tpu.memory_space<vmem>>, vector<1x1x128xf32>
    %26 = vector.shape_cast %25 : vector<1x1x128xf32> to vector<1x128xf32>
    %27 = vector.shape_cast %26 : vector<1x128xf32> to vector<1x1x128xf32>
    %28 = vector.broadcast %27 : vector<1x1x128xf32> to vector<1x16x128xf32>
    %29 = arith.mulf %28, %24 : vector<1x16x128xf32>
    %30 = arith.addf %23, %29 : vector<1x16x128xf32>
    %c127_i32_25 = arith.constant 127 : i32
    %31 = tpu.dynamic_rotate %24 by %c127_i32_25 dim 2 : vector<1x16x128xf32>, i32 -> vector<1x16x128xf32>
    %c3_26 = arith.constant 3 : index
    %c0_27 = arith.constant 0 : index
    %c0_28 = arith.constant 0 : index
    %32 = vector.load %arg1[%c3_26, %c0_27, %c0_28] : memref<49x1x128xf32, #tpu.memory_space<vmem>>, vector<1x1x128xf32>
    %33 = vector.shape_cast %32 : vector<1x1x128xf32> to vector<1x128xf32>
    %34 = vector.shape_cast %33 : vector<1x128xf32> to vector<1x1x128xf32>
    %35 = vector.broadcast %34 : vector<1x1x128xf32> to vector<1x16x128xf32>
    %36 = arith.mulf %35, %31 : vector<1x16x128xf32>
    %37 = arith.addf %30, %36 : vector<1x16x128xf32>
    %c127_i32_29 = arith.constant 127 : i32
    %38 = tpu.dynamic_rotate %31 by %c127_i32_29 dim 2 : vector<1x16x128xf32>, i32 -> vector<1x16x128xf32>
    %c4 = arith.constant 4 : index
    %c0_30 = arith.constant 0 : index
    %c0_31 = arith.constant 0 : index
    %39 = vector.load %arg1[%c4, %c0_30, %c0_31] : memref<49x1x128xf32, #tpu.memory_space<vmem>>, vector<1x1x128xf32>
    %40 = vector.shape_cast %39 : vector<1x1x128xf32> to vector<1x128xf32>
    %41 = vector.shape_cast %40 : vector<1x128xf32> to vector<1x1x128xf32>
    %42 = vector.broadcast %41 : vector<1x1x128xf32> to vector<1x16x128xf32>
    %43 = arith.mulf %42, %38 : vector<1x16x128xf32>
    %44 = arith.addf %37, %43 : vector<1x16x128xf32>
    %c127_i32_32 = arith.constant 127 : i32
    %45 = tpu.dynamic_rotate %38 by %c127_i32_32 dim 2 : vector<1x16x128xf32>, i32 -> vector<1x16x128xf32>
    %c5 = arith.constant 5 : index
    %c0_33 = arith.constant 0 : index
    %c0_34 = arith.constant 0 : index
    %46 = vector.load %arg1[%c5, %c0_33, %c0_34] : memref<49x1x128xf32, #tpu.memory_space<vmem>>, vector<1x1x128xf32>
    %47 = vector.shape_cast %46 : vector<1x1x128xf32> to vector<1x128xf32>
    %48 = vector.shape_cast %47 : vector<1x128xf32> to vector<1x1x128xf32>
    %49 = vector.broadcast %48 : vector<1x1x128xf32> to vector<1x16x128xf32>
    %50 = arith.mulf %49, %45 : vector<1x16x128xf32>
    %51 = arith.addf %44, %50 : vector<1x16x128xf32>
    %c127_i32_35 = arith.constant 127 : i32
    %52 = tpu.dynamic_rotate %45 by %c127_i32_35 dim 2 : vector<1x16x128xf32>, i32 -> vector<1x16x128xf32>
    %c6 = arith.constant 6 : index
    %c0_36 = arith.constant 0 : index
    %c0_37 = arith.constant 0 : index
    %53 = vector.load %arg1[%c6, %c0_36, %c0_37] : memref<49x1x128xf32, #tpu.memory_space<vmem>>, vector<1x1x128xf32>
    %54 = vector.shape_cast %53 : vector<1x1x128xf32> to vector<1x128xf32>
    %55 = vector.shape_cast %54 : vector<1x128xf32> to vector<1x1x128xf32>
    %56 = vector.broadcast %55 : vector<1x1x128xf32> to vector<1x16x128xf32>
    %57 = arith.mulf %56, %52 : vector<1x16x128xf32>
    %58 = arith.addf %51, %57 : vector<1x16x128xf32>
    %c0_38 = arith.constant 0 : index
    %c1_39 = arith.constant 1 : index
    %c0_40 = arith.constant 0 : index
    %59 = vector.load %arg4[%c0_38, %c1_39, %c0_40] : memref<1x22x128xf32, #tpu.memory_space<vmem>>, vector<1x16x128xf32>
    %c7 = arith.constant 7 : index
    %c0_41 = arith.constant 0 : index
    %c0_42 = arith.constant 0 : index
    %60 = vector.load %arg1[%c7, %c0_41, %c0_42] : memref<49x1x128xf32, #tpu.memory_space<vmem>>, vector<1x1x128xf32>
    %61 = vector.shape_cast %60 : vector<1x1x128xf32> to vector<1x128xf32>
    %62 = vector.shape_cast %61 : vector<1x128xf32> to vector<1x1x128xf32>
    %63 = vector.broadcast %62 : vector<1x1x128xf32> to vector<1x16x128xf32>
    %64 = arith.mulf %63, %59 : vector<1x16x128xf32>
    %65 = arith.addf %58, %64 : vector<1x16x128xf32>
    %c127_i32_43 = arith.constant 127 : i32
    %66 = tpu.dynamic_rotate %59 by %c127_i32_43 dim 2 : vector<1x16x128xf32>, i32 -> vector<1x16x128xf32>
    %c8 = arith.constant 8 : index
    %c0_44 = arith.constant 0 : index
    %c0_45 = arith.constant 0 : index
    %67 = vector.load %arg1[%c8, %c0_44, %c0_45] : memref<49x1x128xf32, #tpu.memory_space<vmem>>, vector<1x1x128xf32>
    %68 = vector.shape_cast %67 : vector<1x1x128xf32> to vector<1x128xf32>
    %69 = vector.shape_cast %68 : vector<1x128xf32> to vector<1x1x128xf32>
    %70 = vector.broadcast %69 : vector<1x1x128xf32> to vector<1x16x128xf32>
    %71 = arith.mulf %70, %66 : vector<1x16x128xf32>
    %72 = arith.addf %65, %71 : vector<1x16x128xf32>
    %c127_i32_46 = arith.constant 127 : i32
    %73 = tpu.dynamic_rotate %66 by %c127_i32_46 dim 2 : vector<1x16x128xf32>, i32 -> vector<1x16x128xf32>
    %c9 = arith.constant 9 : index
    %c0_47 = arith.constant 0 : index
    %c0_48 = arith.constant 0 : index
    %74 = vector.load %arg1[%c9, %c0_47, %c0_48] : memref<49x1x128xf32, #tpu.memory_space<vmem>>, vector<1x1x128xf32>
    %75 = vector.shape_cast %74 : vector<1x1x128xf32> to vector<1x128xf32>
    %76 = vector.shape_cast %75 : vector<1x128xf32> to vector<1x1x128xf32>
    %77 = vector.broadcast %76 : vector<1x1x128xf32> to vector<1x16x128xf32>
    %78 = arith.mulf %77, %73 : vector<1x16x128xf32>
    %79 = arith.addf %72, %78 : vector<1x16x128xf32>
    %c127_i32_49 = arith.constant 127 : i32
    %80 = tpu.dynamic_rotate %73 by %c127_i32_49 dim 2 : vector<1x16x128xf32>, i32 -> vector<1x16x128xf32>
    %c10 = arith.constant 10 : index
    %c0_50 = arith.constant 0 : index
    %c0_51 = arith.constant 0 : index
    %81 = vector.load %arg1[%c10, %c0_50, %c0_51] : memref<49x1x128xf32, #tpu.memory_space<vmem>>, vector<1x1x128xf32>
    %82 = vector.shape_cast %81 : vector<1x1x128xf32> to vector<1x128xf32>
    %83 = vector.shape_cast %82 : vector<1x128xf32> to vector<1x1x128xf32>
    %84 = vector.broadcast %83 : vector<1x1x128xf32> to vector<1x16x128xf32>
    %85 = arith.mulf %84, %80 : vector<1x16x128xf32>
    %86 = arith.addf %79, %85 : vector<1x16x128xf32>
    %c127_i32_52 = arith.constant 127 : i32
    %87 = tpu.dynamic_rotate %80 by %c127_i32_52 dim 2 : vector<1x16x128xf32>, i32 -> vector<1x16x128xf32>
    %c11 = arith.constant 11 : index
    %c0_53 = arith.constant 0 : index
    %c0_54 = arith.constant 0 : index
    %88 = vector.load %arg1[%c11, %c0_53, %c0_54] : memref<49x1x128xf32, #tpu.memory_space<vmem>>, vector<1x1x128xf32>
    %89 = vector.shape_cast %88 : vector<1x1x128xf32> to vector<1x128xf32>
    %90 = vector.shape_cast %89 : vector<1x128xf32> to vector<1x1x128xf32>
    %91 = vector.broadcast %90 : vector<1x1x128xf32> to vector<1x16x128xf32>
    %92 = arith.mulf %91, %87 : vector<1x16x128xf32>
    %93 = arith.addf %86, %92 : vector<1x16x128xf32>
    %c127_i32_55 = arith.constant 127 : i32
    %94 = tpu.dynamic_rotate %87 by %c127_i32_55 dim 2 : vector<1x16x128xf32>, i32 -> vector<1x16x128xf32>
    %c12 = arith.constant 12 : index
    %c0_56 = arith.constant 0 : index
    %c0_57 = arith.constant 0 : index
    %95 = vector.load %arg1[%c12, %c0_56, %c0_57] : memref<49x1x128xf32, #tpu.memory_space<vmem>>, vector<1x1x128xf32>
    %96 = vector.shape_cast %95 : vector<1x1x128xf32> to vector<1x128xf32>
    %97 = vector.shape_cast %96 : vector<1x128xf32> to vector<1x1x128xf32>
    %98 = vector.broadcast %97 : vector<1x1x128xf32> to vector<1x16x128xf32>
    %99 = arith.mulf %98, %94 : vector<1x16x128xf32>
    %100 = arith.addf %93, %99 : vector<1x16x128xf32>
    %c127_i32_58 = arith.constant 127 : i32
    %101 = tpu.dynamic_rotate %94 by %c127_i32_58 dim 2 : vector<1x16x128xf32>, i32 -> vector<1x16x128xf32>
    %c13 = arith.constant 13 : index
    %c0_59 = arith.constant 0 : index
    %c0_60 = arith.constant 0 : index
    %102 = vector.load %arg1[%c13, %c0_59, %c0_60] : memref<49x1x128xf32, #tpu.memory_space<vmem>>, vector<1x1x128xf32>
    %103 = vector.shape_cast %102 : vector<1x1x128xf32> to vector<1x128xf32>
    %104 = vector.shape_cast %103 : vector<1x128xf32> to vector<1x1x128xf32>
    %105 = vector.broadcast %104 : vector<1x1x128xf32> to vector<1x16x128xf32>
    %106 = arith.mulf %105, %101 : vector<1x16x128xf32>
    %107 = arith.addf %100, %106 : vector<1x16x128xf32>
    %c0_61 = arith.constant 0 : index
    %c2_62 = arith.constant 2 : index
    %c0_63 = arith.constant 0 : index
    %108 = vector.load %arg4[%c0_61, %c2_62, %c0_63] : memref<1x22x128xf32, #tpu.memory_space<vmem>>, vector<1x16x128xf32>
    %c14 = arith.constant 14 : index
    %c0_64 = arith.constant 0 : index
    %c0_65 = arith.constant 0 : index
    %109 = vector.load %arg1[%c14, %c0_64, %c0_65] : memref<49x1x128xf32, #tpu.memory_space<vmem>>, vector<1x1x128xf32>
    %110 = vector.shape_cast %109 : vector<1x1x128xf32> to vector<1x128xf32>
    %111 = vector.shape_cast %110 : vector<1x128xf32> to vector<1x1x128xf32>
    %112 = vector.broadcast %111 : vector<1x1x128xf32> to vector<1x16x128xf32>
    %113 = arith.mulf %112, %108 : vector<1x16x128xf32>
    %114 = arith.addf %107, %113 : vector<1x16x128xf32>
    %c127_i32_66 = arith.constant 127 : i32
    %115 = tpu.dynamic_rotate %108 by %c127_i32_66 dim 2 : vector<1x16x128xf32>, i32 -> vector<1x16x128xf32>
    %c15 = arith.constant 15 : index
    %c0_67 = arith.constant 0 : index
    %c0_68 = arith.constant 0 : index
    %116 = vector.load %arg1[%c15, %c0_67, %c0_68] : memref<49x1x128xf32, #tpu.memory_space<vmem>>, vector<1x1x128xf32>
    %117 = vector.shape_cast %116 : vector<1x1x128xf32> to vector<1x128xf32>
    %118 = vector.shape_cast %117 : vector<1x128xf32> to vector<1x1x128xf32>
    %119 = vector.broadcast %118 : vector<1x1x128xf32> to vector<1x16x128xf32>
    %120 = arith.mulf %119, %115 : vector<1x16x128xf32>
    %121 = arith.addf %114, %120 : vector<1x16x128xf32>
    %c127_i32_69 = arith.constant 127 : i32
    %122 = tpu.dynamic_rotate %115 by %c127_i32_69 dim 2 : vector<1x16x128xf32>, i32 -> vector<1x16x128xf32>
    %c16 = arith.constant 16 : index
    %c0_70 = arith.constant 0 : index
    %c0_71 = arith.constant 0 : index
    %123 = vector.load %arg1[%c16, %c0_70, %c0_71] : memref<49x1x128xf32, #tpu.memory_space<vmem>>, vector<1x1x128xf32>
    %124 = vector.shape_cast %123 : vector<1x1x128xf32> to vector<1x128xf32>
    %125 = vector.shape_cast %124 : vector<1x128xf32> to vector<1x1x128xf32>
    %126 = vector.broadcast %125 : vector<1x1x128xf32> to vector<1x16x128xf32>
    %127 = arith.mulf %126, %122 : vector<1x16x128xf32>
    %128 = arith.addf %121, %127 : vector<1x16x128xf32>
    %c127_i32_72 = arith.constant 127 : i32
    %129 = tpu.dynamic_rotate %122 by %c127_i32_72 dim 2 : vector<1x16x128xf32>, i32 -> vector<1x16x128xf32>
    %c17 = arith.constant 17 : index
    %c0_73 = arith.constant 0 : index
    %c0_74 = arith.constant 0 : index
    %130 = vector.load %arg1[%c17, %c0_73, %c0_74] : memref<49x1x128xf32, #tpu.memory_space<vmem>>, vector<1x1x128xf32>
    %131 = vector.shape_cast %130 : vector<1x1x128xf32> to vector<1x128xf32>
    %132 = vector.shape_cast %131 : vector<1x128xf32> to vector<1x1x128xf32>
    %133 = vector.broadcast %132 : vector<1x1x128xf32> to vector<1x16x128xf32>
    %134 = arith.mulf %133, %129 : vector<1x16x128xf32>
    %135 = arith.addf %128, %134 : vector<1x16x128xf32>
    %c127_i32_75 = arith.constant 127 : i32
    %136 = tpu.dynamic_rotate %129 by %c127_i32_75 dim 2 : vector<1x16x128xf32>, i32 -> vector<1x16x128xf32>
    %c18 = arith.constant 18 : index
    %c0_76 = arith.constant 0 : index
    %c0_77 = arith.constant 0 : index
    %137 = vector.load %arg1[%c18, %c0_76, %c0_77] : memref<49x1x128xf32, #tpu.memory_space<vmem>>, vector<1x1x128xf32>
    %138 = vector.shape_cast %137 : vector<1x1x128xf32> to vector<1x128xf32>
    %139 = vector.shape_cast %138 : vector<1x128xf32> to vector<1x1x128xf32>
    %140 = vector.broadcast %139 : vector<1x1x128xf32> to vector<1x16x128xf32>
    %141 = arith.mulf %140, %136 : vector<1x16x128xf32>
    %142 = arith.addf %135, %141 : vector<1x16x128xf32>
    %c127_i32_78 = arith.constant 127 : i32
    %143 = tpu.dynamic_rotate %136 by %c127_i32_78 dim 2 : vector<1x16x128xf32>, i32 -> vector<1x16x128xf32>
    %c19 = arith.constant 19 : index
    %c0_79 = arith.constant 0 : index
    %c0_80 = arith.constant 0 : index
    %144 = vector.load %arg1[%c19, %c0_79, %c0_80] : memref<49x1x128xf32, #tpu.memory_space<vmem>>, vector<1x1x128xf32>
    %145 = vector.shape_cast %144 : vector<1x1x128xf32> to vector<1x128xf32>
    %146 = vector.shape_cast %145 : vector<1x128xf32> to vector<1x1x128xf32>
    %147 = vector.broadcast %146 : vector<1x1x128xf32> to vector<1x16x128xf32>
    %148 = arith.mulf %147, %143 : vector<1x16x128xf32>
    %149 = arith.addf %142, %148 : vector<1x16x128xf32>
    %c127_i32_81 = arith.constant 127 : i32
    %150 = tpu.dynamic_rotate %143 by %c127_i32_81 dim 2 : vector<1x16x128xf32>, i32 -> vector<1x16x128xf32>
    %c20 = arith.constant 20 : index
    %c0_82 = arith.constant 0 : index
    %c0_83 = arith.constant 0 : index
    %151 = vector.load %arg1[%c20, %c0_82, %c0_83] : memref<49x1x128xf32, #tpu.memory_space<vmem>>, vector<1x1x128xf32>
    %152 = vector.shape_cast %151 : vector<1x1x128xf32> to vector<1x128xf32>
    %153 = vector.shape_cast %152 : vector<1x128xf32> to vector<1x1x128xf32>
    %154 = vector.broadcast %153 : vector<1x1x128xf32> to vector<1x16x128xf32>
    %155 = arith.mulf %154, %150 : vector<1x16x128xf32>
    %156 = arith.addf %149, %155 : vector<1x16x128xf32>
    %c0_84 = arith.constant 0 : index
    %c3_85 = arith.constant 3 : index
    %c0_86 = arith.constant 0 : index
    %157 = vector.load %arg4[%c0_84, %c3_85, %c0_86] : memref<1x22x128xf32, #tpu.memory_space<vmem>>, vector<1x16x128xf32>
    %c21 = arith.constant 21 : index
    %c0_87 = arith.constant 0 : index
    %c0_88 = arith.constant 0 : index
    %158 = vector.load %arg1[%c21, %c0_87, %c0_88] : memref<49x1x128xf32, #tpu.memory_space<vmem>>, vector<1x1x128xf32>
    %159 = vector.shape_cast %158 : vector<1x1x128xf32> to vector<1x128xf32>
    %160 = vector.shape_cast %159 : vector<1x128xf32> to vector<1x1x128xf32>
    %161 = vector.broadcast %160 : vector<1x1x128xf32> to vector<1x16x128xf32>
    %162 = arith.mulf %161, %157 : vector<1x16x128xf32>
    %163 = arith.addf %156, %162 : vector<1x16x128xf32>
    %c127_i32_89 = arith.constant 127 : i32
    %164 = tpu.dynamic_rotate %157 by %c127_i32_89 dim 2 : vector<1x16x128xf32>, i32 -> vector<1x16x128xf32>
    %c22 = arith.constant 22 : index
    %c0_90 = arith.constant 0 : index
    %c0_91 = arith.constant 0 : index
    %165 = vector.load %arg1[%c22, %c0_90, %c0_91] : memref<49x1x128xf32, #tpu.memory_space<vmem>>, vector<1x1x128xf32>
    %166 = vector.shape_cast %165 : vector<1x1x128xf32> to vector<1x128xf32>
    %167 = vector.shape_cast %166 : vector<1x128xf32> to vector<1x1x128xf32>
    %168 = vector.broadcast %167 : vector<1x1x128xf32> to vector<1x16x128xf32>
    %169 = arith.mulf %168, %164 : vector<1x16x128xf32>
    %170 = arith.addf %163, %169 : vector<1x16x128xf32>
    %c127_i32_92 = arith.constant 127 : i32
    %171 = tpu.dynamic_rotate %164 by %c127_i32_92 dim 2 : vector<1x16x128xf32>, i32 -> vector<1x16x128xf32>
    %c23 = arith.constant 23 : index
    %c0_93 = arith.constant 0 : index
    %c0_94 = arith.constant 0 : index
    %172 = vector.load %arg1[%c23, %c0_93, %c0_94] : memref<49x1x128xf32, #tpu.memory_space<vmem>>, vector<1x1x128xf32>
    %173 = vector.shape_cast %172 : vector<1x1x128xf32> to vector<1x128xf32>
    %174 = vector.shape_cast %173 : vector<1x128xf32> to vector<1x1x128xf32>
    %175 = vector.broadcast %174 : vector<1x1x128xf32> to vector<1x16x128xf32>
    %176 = arith.mulf %175, %171 : vector<1x16x128xf32>
    %177 = arith.addf %170, %176 : vector<1x16x128xf32>
    %c127_i32_95 = arith.constant 127 : i32
    %178 = tpu.dynamic_rotate %171 by %c127_i32_95 dim 2 : vector<1x16x128xf32>, i32 -> vector<1x16x128xf32>
    %c24 = arith.constant 24 : index
    %c0_96 = arith.constant 0 : index
    %c0_97 = arith.constant 0 : index
    %179 = vector.load %arg1[%c24, %c0_96, %c0_97] : memref<49x1x128xf32, #tpu.memory_space<vmem>>, vector<1x1x128xf32>
    %180 = vector.shape_cast %179 : vector<1x1x128xf32> to vector<1x128xf32>
    %181 = vector.shape_cast %180 : vector<1x128xf32> to vector<1x1x128xf32>
    %182 = vector.broadcast %181 : vector<1x1x128xf32> to vector<1x16x128xf32>
    %183 = arith.mulf %182, %178 : vector<1x16x128xf32>
    %184 = arith.addf %177, %183 : vector<1x16x128xf32>
    %c127_i32_98 = arith.constant 127 : i32
    %185 = tpu.dynamic_rotate %178 by %c127_i32_98 dim 2 : vector<1x16x128xf32>, i32 -> vector<1x16x128xf32>
    %c25 = arith.constant 25 : index
    %c0_99 = arith.constant 0 : index
    %c0_100 = arith.constant 0 : index
    %186 = vector.load %arg1[%c25, %c0_99, %c0_100] : memref<49x1x128xf32, #tpu.memory_space<vmem>>, vector<1x1x128xf32>
    %187 = vector.shape_cast %186 : vector<1x1x128xf32> to vector<1x128xf32>
    %188 = vector.shape_cast %187 : vector<1x128xf32> to vector<1x1x128xf32>
    %189 = vector.broadcast %188 : vector<1x1x128xf32> to vector<1x16x128xf32>
    %190 = arith.mulf %189, %185 : vector<1x16x128xf32>
    %191 = arith.addf %184, %190 : vector<1x16x128xf32>
    %c127_i32_101 = arith.constant 127 : i32
    %192 = tpu.dynamic_rotate %185 by %c127_i32_101 dim 2 : vector<1x16x128xf32>, i32 -> vector<1x16x128xf32>
    %c26 = arith.constant 26 : index
    %c0_102 = arith.constant 0 : index
    %c0_103 = arith.constant 0 : index
    %193 = vector.load %arg1[%c26, %c0_102, %c0_103] : memref<49x1x128xf32, #tpu.memory_space<vmem>>, vector<1x1x128xf32>
    %194 = vector.shape_cast %193 : vector<1x1x128xf32> to vector<1x128xf32>
    %195 = vector.shape_cast %194 : vector<1x128xf32> to vector<1x1x128xf32>
    %196 = vector.broadcast %195 : vector<1x1x128xf32> to vector<1x16x128xf32>
    %197 = arith.mulf %196, %192 : vector<1x16x128xf32>
    %198 = arith.addf %191, %197 : vector<1x16x128xf32>
    %c127_i32_104 = arith.constant 127 : i32
    %199 = tpu.dynamic_rotate %192 by %c127_i32_104 dim 2 : vector<1x16x128xf32>, i32 -> vector<1x16x128xf32>
    %c27_105 = arith.constant 27 : index
    %c0_106 = arith.constant 0 : index
    %c0_107 = arith.constant 0 : index
    %200 = vector.load %arg1[%c27_105, %c0_106, %c0_107] : memref<49x1x128xf32, #tpu.memory_space<vmem>>, vector<1x1x128xf32>
    %201 = vector.shape_cast %200 : vector<1x1x128xf32> to vector<1x128xf32>
    %202 = vector.shape_cast %201 : vector<1x128xf32> to vector<1x1x128xf32>
    %203 = vector.broadcast %202 : vector<1x1x128xf32> to vector<1x16x128xf32>
    %204 = arith.mulf %203, %199 : vector<1x16x128xf32>
    %205 = arith.addf %198, %204 : vector<1x16x128xf32>
    %c0_108 = arith.constant 0 : index
    %c4_109 = arith.constant 4 : index
    %c0_110 = arith.constant 0 : index
    %206 = vector.load %arg4[%c0_108, %c4_109, %c0_110] : memref<1x22x128xf32, #tpu.memory_space<vmem>>, vector<1x16x128xf32>
    %c28 = arith.constant 28 : index
    %c0_111 = arith.constant 0 : index
    %c0_112 = arith.constant 0 : index
    %207 = vector.load %arg1[%c28, %c0_111, %c0_112] : memref<49x1x128xf32, #tpu.memory_space<vmem>>, vector<1x1x128xf32>
    %208 = vector.shape_cast %207 : vector<1x1x128xf32> to vector<1x128xf32>
    %209 = vector.shape_cast %208 : vector<1x128xf32> to vector<1x1x128xf32>
    %210 = vector.broadcast %209 : vector<1x1x128xf32> to vector<1x16x128xf32>
    %211 = arith.mulf %210, %206 : vector<1x16x128xf32>
    %212 = arith.addf %205, %211 : vector<1x16x128xf32>
    %c127_i32_113 = arith.constant 127 : i32
    %213 = tpu.dynamic_rotate %206 by %c127_i32_113 dim 2 : vector<1x16x128xf32>, i32 -> vector<1x16x128xf32>
    %c29 = arith.constant 29 : index
    %c0_114 = arith.constant 0 : index
    %c0_115 = arith.constant 0 : index
    %214 = vector.load %arg1[%c29, %c0_114, %c0_115] : memref<49x1x128xf32, #tpu.memory_space<vmem>>, vector<1x1x128xf32>
    %215 = vector.shape_cast %214 : vector<1x1x128xf32> to vector<1x128xf32>
    %216 = vector.shape_cast %215 : vector<1x128xf32> to vector<1x1x128xf32>
    %217 = vector.broadcast %216 : vector<1x1x128xf32> to vector<1x16x128xf32>
    %218 = arith.mulf %217, %213 : vector<1x16x128xf32>
    %219 = arith.addf %212, %218 : vector<1x16x128xf32>
    %c127_i32_116 = arith.constant 127 : i32
    %220 = tpu.dynamic_rotate %213 by %c127_i32_116 dim 2 : vector<1x16x128xf32>, i32 -> vector<1x16x128xf32>
    %c30 = arith.constant 30 : index
    %c0_117 = arith.constant 0 : index
    %c0_118 = arith.constant 0 : index
    %221 = vector.load %arg1[%c30, %c0_117, %c0_118] : memref<49x1x128xf32, #tpu.memory_space<vmem>>, vector<1x1x128xf32>
    %222 = vector.shape_cast %221 : vector<1x1x128xf32> to vector<1x128xf32>
    %223 = vector.shape_cast %222 : vector<1x128xf32> to vector<1x1x128xf32>
    %224 = vector.broadcast %223 : vector<1x1x128xf32> to vector<1x16x128xf32>
    %225 = arith.mulf %224, %220 : vector<1x16x128xf32>
    %226 = arith.addf %219, %225 : vector<1x16x128xf32>
    %c127_i32_119 = arith.constant 127 : i32
    %227 = tpu.dynamic_rotate %220 by %c127_i32_119 dim 2 : vector<1x16x128xf32>, i32 -> vector<1x16x128xf32>
    %c31 = arith.constant 31 : index
    %c0_120 = arith.constant 0 : index
    %c0_121 = arith.constant 0 : index
    %228 = vector.load %arg1[%c31, %c0_120, %c0_121] : memref<49x1x128xf32, #tpu.memory_space<vmem>>, vector<1x1x128xf32>
    %229 = vector.shape_cast %228 : vector<1x1x128xf32> to vector<1x128xf32>
    %230 = vector.shape_cast %229 : vector<1x128xf32> to vector<1x1x128xf32>
    %231 = vector.broadcast %230 : vector<1x1x128xf32> to vector<1x16x128xf32>
    %232 = arith.mulf %231, %227 : vector<1x16x128xf32>
    %233 = arith.addf %226, %232 : vector<1x16x128xf32>
    %c127_i32_122 = arith.constant 127 : i32
    %234 = tpu.dynamic_rotate %227 by %c127_i32_122 dim 2 : vector<1x16x128xf32>, i32 -> vector<1x16x128xf32>
    %c32 = arith.constant 32 : index
    %c0_123 = arith.constant 0 : index
    %c0_124 = arith.constant 0 : index
    %235 = vector.load %arg1[%c32, %c0_123, %c0_124] : memref<49x1x128xf32, #tpu.memory_space<vmem>>, vector<1x1x128xf32>
    %236 = vector.shape_cast %235 : vector<1x1x128xf32> to vector<1x128xf32>
    %237 = vector.shape_cast %236 : vector<1x128xf32> to vector<1x1x128xf32>
    %238 = vector.broadcast %237 : vector<1x1x128xf32> to vector<1x16x128xf32>
    %239 = arith.mulf %238, %234 : vector<1x16x128xf32>
    %240 = arith.addf %233, %239 : vector<1x16x128xf32>
    %c127_i32_125 = arith.constant 127 : i32
    %241 = tpu.dynamic_rotate %234 by %c127_i32_125 dim 2 : vector<1x16x128xf32>, i32 -> vector<1x16x128xf32>
    %c33 = arith.constant 33 : index
    %c0_126 = arith.constant 0 : index
    %c0_127 = arith.constant 0 : index
    %242 = vector.load %arg1[%c33, %c0_126, %c0_127] : memref<49x1x128xf32, #tpu.memory_space<vmem>>, vector<1x1x128xf32>
    %243 = vector.shape_cast %242 : vector<1x1x128xf32> to vector<1x128xf32>
    %244 = vector.shape_cast %243 : vector<1x128xf32> to vector<1x1x128xf32>
    %245 = vector.broadcast %244 : vector<1x1x128xf32> to vector<1x16x128xf32>
    %246 = arith.mulf %245, %241 : vector<1x16x128xf32>
    %247 = arith.addf %240, %246 : vector<1x16x128xf32>
    %c127_i32_128 = arith.constant 127 : i32
    %248 = tpu.dynamic_rotate %241 by %c127_i32_128 dim 2 : vector<1x16x128xf32>, i32 -> vector<1x16x128xf32>
    %c34 = arith.constant 34 : index
    %c0_129 = arith.constant 0 : index
    %c0_130 = arith.constant 0 : index
    %249 = vector.load %arg1[%c34, %c0_129, %c0_130] : memref<49x1x128xf32, #tpu.memory_space<vmem>>, vector<1x1x128xf32>
    %250 = vector.shape_cast %249 : vector<1x1x128xf32> to vector<1x128xf32>
    %251 = vector.shape_cast %250 : vector<1x128xf32> to vector<1x1x128xf32>
    %252 = vector.broadcast %251 : vector<1x1x128xf32> to vector<1x16x128xf32>
    %253 = arith.mulf %252, %248 : vector<1x16x128xf32>
    %254 = arith.addf %247, %253 : vector<1x16x128xf32>
    %c0_131 = arith.constant 0 : index
    %c5_132 = arith.constant 5 : index
    %c0_133 = arith.constant 0 : index
    %255 = vector.load %arg4[%c0_131, %c5_132, %c0_133] : memref<1x22x128xf32, #tpu.memory_space<vmem>>, vector<1x16x128xf32>
    %c35 = arith.constant 35 : index
    %c0_134 = arith.constant 0 : index
    %c0_135 = arith.constant 0 : index
    %256 = vector.load %arg1[%c35, %c0_134, %c0_135] : memref<49x1x128xf32, #tpu.memory_space<vmem>>, vector<1x1x128xf32>
    %257 = vector.shape_cast %256 : vector<1x1x128xf32> to vector<1x128xf32>
    %258 = vector.shape_cast %257 : vector<1x128xf32> to vector<1x1x128xf32>
    %259 = vector.broadcast %258 : vector<1x1x128xf32> to vector<1x16x128xf32>
    %260 = arith.mulf %259, %255 : vector<1x16x128xf32>
    %261 = arith.addf %254, %260 : vector<1x16x128xf32>
    %c127_i32_136 = arith.constant 127 : i32
    %262 = tpu.dynamic_rotate %255 by %c127_i32_136 dim 2 : vector<1x16x128xf32>, i32 -> vector<1x16x128xf32>
    %c36 = arith.constant 36 : index
    %c0_137 = arith.constant 0 : index
    %c0_138 = arith.constant 0 : index
    %263 = vector.load %arg1[%c36, %c0_137, %c0_138] : memref<49x1x128xf32, #tpu.memory_space<vmem>>, vector<1x1x128xf32>
    %264 = vector.shape_cast %263 : vector<1x1x128xf32> to vector<1x128xf32>
    %265 = vector.shape_cast %264 : vector<1x128xf32> to vector<1x1x128xf32>
    %266 = vector.broadcast %265 : vector<1x1x128xf32> to vector<1x16x128xf32>
    %267 = arith.mulf %266, %262 : vector<1x16x128xf32>
    %268 = arith.addf %261, %267 : vector<1x16x128xf32>
    %c127_i32_139 = arith.constant 127 : i32
    %269 = tpu.dynamic_rotate %262 by %c127_i32_139 dim 2 : vector<1x16x128xf32>, i32 -> vector<1x16x128xf32>
    %c37 = arith.constant 37 : index
    %c0_140 = arith.constant 0 : index
    %c0_141 = arith.constant 0 : index
    %270 = vector.load %arg1[%c37, %c0_140, %c0_141] : memref<49x1x128xf32, #tpu.memory_space<vmem>>, vector<1x1x128xf32>
    %271 = vector.shape_cast %270 : vector<1x1x128xf32> to vector<1x128xf32>
    %272 = vector.shape_cast %271 : vector<1x128xf32> to vector<1x1x128xf32>
    %273 = vector.broadcast %272 : vector<1x1x128xf32> to vector<1x16x128xf32>
    %274 = arith.mulf %273, %269 : vector<1x16x128xf32>
    %275 = arith.addf %268, %274 : vector<1x16x128xf32>
    %c127_i32_142 = arith.constant 127 : i32
    %276 = tpu.dynamic_rotate %269 by %c127_i32_142 dim 2 : vector<1x16x128xf32>, i32 -> vector<1x16x128xf32>
    %c38 = arith.constant 38 : index
    %c0_143 = arith.constant 0 : index
    %c0_144 = arith.constant 0 : index
    %277 = vector.load %arg1[%c38, %c0_143, %c0_144] : memref<49x1x128xf32, #tpu.memory_space<vmem>>, vector<1x1x128xf32>
    %278 = vector.shape_cast %277 : vector<1x1x128xf32> to vector<1x128xf32>
    %279 = vector.shape_cast %278 : vector<1x128xf32> to vector<1x1x128xf32>
    %280 = vector.broadcast %279 : vector<1x1x128xf32> to vector<1x16x128xf32>
    %281 = arith.mulf %280, %276 : vector<1x16x128xf32>
    %282 = arith.addf %275, %281 : vector<1x16x128xf32>
    %c127_i32_145 = arith.constant 127 : i32
    %283 = tpu.dynamic_rotate %276 by %c127_i32_145 dim 2 : vector<1x16x128xf32>, i32 -> vector<1x16x128xf32>
    %c39 = arith.constant 39 : index
    %c0_146 = arith.constant 0 : index
    %c0_147 = arith.constant 0 : index
    %284 = vector.load %arg1[%c39, %c0_146, %c0_147] : memref<49x1x128xf32, #tpu.memory_space<vmem>>, vector<1x1x128xf32>
    %285 = vector.shape_cast %284 : vector<1x1x128xf32> to vector<1x128xf32>
    %286 = vector.shape_cast %285 : vector<1x128xf32> to vector<1x1x128xf32>
    %287 = vector.broadcast %286 : vector<1x1x128xf32> to vector<1x16x128xf32>
    %288 = arith.mulf %287, %283 : vector<1x16x128xf32>
    %289 = arith.addf %282, %288 : vector<1x16x128xf32>
    %c127_i32_148 = arith.constant 127 : i32
    %290 = tpu.dynamic_rotate %283 by %c127_i32_148 dim 2 : vector<1x16x128xf32>, i32 -> vector<1x16x128xf32>
    %c40 = arith.constant 40 : index
    %c0_149 = arith.constant 0 : index
    %c0_150 = arith.constant 0 : index
    %291 = vector.load %arg1[%c40, %c0_149, %c0_150] : memref<49x1x128xf32, #tpu.memory_space<vmem>>, vector<1x1x128xf32>
    %292 = vector.shape_cast %291 : vector<1x1x128xf32> to vector<1x128xf32>
    %293 = vector.shape_cast %292 : vector<1x128xf32> to vector<1x1x128xf32>
    %294 = vector.broadcast %293 : vector<1x1x128xf32> to vector<1x16x128xf32>
    %295 = arith.mulf %294, %290 : vector<1x16x128xf32>
    %296 = arith.addf %289, %295 : vector<1x16x128xf32>
    %c127_i32_151 = arith.constant 127 : i32
    %297 = tpu.dynamic_rotate %290 by %c127_i32_151 dim 2 : vector<1x16x128xf32>, i32 -> vector<1x16x128xf32>
    %c41 = arith.constant 41 : index
    %c0_152 = arith.constant 0 : index
    %c0_153 = arith.constant 0 : index
    %298 = vector.load %arg1[%c41, %c0_152, %c0_153] : memref<49x1x128xf32, #tpu.memory_space<vmem>>, vector<1x1x128xf32>
    %299 = vector.shape_cast %298 : vector<1x1x128xf32> to vector<1x128xf32>
    %300 = vector.shape_cast %299 : vector<1x128xf32> to vector<1x1x128xf32>
    %301 = vector.broadcast %300 : vector<1x1x128xf32> to vector<1x16x128xf32>
    %302 = arith.mulf %301, %297 : vector<1x16x128xf32>
    %303 = arith.addf %296, %302 : vector<1x16x128xf32>
    %c0_154 = arith.constant 0 : index
    %c6_155 = arith.constant 6 : index
    %c0_156 = arith.constant 0 : index
    %304 = vector.load %arg4[%c0_154, %c6_155, %c0_156] : memref<1x22x128xf32, #tpu.memory_space<vmem>>, vector<1x16x128xf32>
    %c42 = arith.constant 42 : index
    %c0_157 = arith.constant 0 : index
    %c0_158 = arith.constant 0 : index
    %305 = vector.load %arg1[%c42, %c0_157, %c0_158] : memref<49x1x128xf32, #tpu.memory_space<vmem>>, vector<1x1x128xf32>
    %306 = vector.shape_cast %305 : vector<1x1x128xf32> to vector<1x128xf32>
    %307 = vector.shape_cast %306 : vector<1x128xf32> to vector<1x1x128xf32>
    %308 = vector.broadcast %307 : vector<1x1x128xf32> to vector<1x16x128xf32>
    %309 = arith.mulf %308, %304 : vector<1x16x128xf32>
    %310 = arith.addf %303, %309 : vector<1x16x128xf32>
    %c127_i32_159 = arith.constant 127 : i32
    %311 = tpu.dynamic_rotate %304 by %c127_i32_159 dim 2 : vector<1x16x128xf32>, i32 -> vector<1x16x128xf32>
    %c43 = arith.constant 43 : index
    %c0_160 = arith.constant 0 : index
    %c0_161 = arith.constant 0 : index
    %312 = vector.load %arg1[%c43, %c0_160, %c0_161] : memref<49x1x128xf32, #tpu.memory_space<vmem>>, vector<1x1x128xf32>
    %313 = vector.shape_cast %312 : vector<1x1x128xf32> to vector<1x128xf32>
    %314 = vector.shape_cast %313 : vector<1x128xf32> to vector<1x1x128xf32>
    %315 = vector.broadcast %314 : vector<1x1x128xf32> to vector<1x16x128xf32>
    %316 = arith.mulf %315, %311 : vector<1x16x128xf32>
    %317 = arith.addf %310, %316 : vector<1x16x128xf32>
    %c127_i32_162 = arith.constant 127 : i32
    %318 = tpu.dynamic_rotate %311 by %c127_i32_162 dim 2 : vector<1x16x128xf32>, i32 -> vector<1x16x128xf32>
    %c44 = arith.constant 44 : index
    %c0_163 = arith.constant 0 : index
    %c0_164 = arith.constant 0 : index
    %319 = vector.load %arg1[%c44, %c0_163, %c0_164] : memref<49x1x128xf32, #tpu.memory_space<vmem>>, vector<1x1x128xf32>
    %320 = vector.shape_cast %319 : vector<1x1x128xf32> to vector<1x128xf32>
    %321 = vector.shape_cast %320 : vector<1x128xf32> to vector<1x1x128xf32>
    %322 = vector.broadcast %321 : vector<1x1x128xf32> to vector<1x16x128xf32>
    %323 = arith.mulf %322, %318 : vector<1x16x128xf32>
    %324 = arith.addf %317, %323 : vector<1x16x128xf32>
    %c127_i32_165 = arith.constant 127 : i32
    %325 = tpu.dynamic_rotate %318 by %c127_i32_165 dim 2 : vector<1x16x128xf32>, i32 -> vector<1x16x128xf32>
    %c45 = arith.constant 45 : index
    %c0_166 = arith.constant 0 : index
    %c0_167 = arith.constant 0 : index
    %326 = vector.load %arg1[%c45, %c0_166, %c0_167] : memref<49x1x128xf32, #tpu.memory_space<vmem>>, vector<1x1x128xf32>
    %327 = vector.shape_cast %326 : vector<1x1x128xf32> to vector<1x128xf32>
    %328 = vector.shape_cast %327 : vector<1x128xf32> to vector<1x1x128xf32>
    %329 = vector.broadcast %328 : vector<1x1x128xf32> to vector<1x16x128xf32>
    %330 = arith.mulf %329, %325 : vector<1x16x128xf32>
    %331 = arith.addf %324, %330 : vector<1x16x128xf32>
    %c127_i32_168 = arith.constant 127 : i32
    %332 = tpu.dynamic_rotate %325 by %c127_i32_168 dim 2 : vector<1x16x128xf32>, i32 -> vector<1x16x128xf32>
    %c46 = arith.constant 46 : index
    %c0_169 = arith.constant 0 : index
    %c0_170 = arith.constant 0 : index
    %333 = vector.load %arg1[%c46, %c0_169, %c0_170] : memref<49x1x128xf32, #tpu.memory_space<vmem>>, vector<1x1x128xf32>
    %334 = vector.shape_cast %333 : vector<1x1x128xf32> to vector<1x128xf32>
    %335 = vector.shape_cast %334 : vector<1x128xf32> to vector<1x1x128xf32>
    %336 = vector.broadcast %335 : vector<1x1x128xf32> to vector<1x16x128xf32>
    %337 = arith.mulf %336, %332 : vector<1x16x128xf32>
    %338 = arith.addf %331, %337 : vector<1x16x128xf32>
    %c127_i32_171 = arith.constant 127 : i32
    %339 = tpu.dynamic_rotate %332 by %c127_i32_171 dim 2 : vector<1x16x128xf32>, i32 -> vector<1x16x128xf32>
    %c47 = arith.constant 47 : index
    %c0_172 = arith.constant 0 : index
    %c0_173 = arith.constant 0 : index
    %340 = vector.load %arg1[%c47, %c0_172, %c0_173] : memref<49x1x128xf32, #tpu.memory_space<vmem>>, vector<1x1x128xf32>
    %341 = vector.shape_cast %340 : vector<1x1x128xf32> to vector<1x128xf32>
    %342 = vector.shape_cast %341 : vector<1x128xf32> to vector<1x1x128xf32>
    %343 = vector.broadcast %342 : vector<1x1x128xf32> to vector<1x16x128xf32>
    %344 = arith.mulf %343, %339 : vector<1x16x128xf32>
    %345 = arith.addf %338, %344 : vector<1x16x128xf32>
    %c127_i32_174 = arith.constant 127 : i32
    %346 = tpu.dynamic_rotate %339 by %c127_i32_174 dim 2 : vector<1x16x128xf32>, i32 -> vector<1x16x128xf32>
    %c48 = arith.constant 48 : index
    %c0_175 = arith.constant 0 : index
    %c0_176 = arith.constant 0 : index
    %347 = vector.load %arg1[%c48, %c0_175, %c0_176] : memref<49x1x128xf32, #tpu.memory_space<vmem>>, vector<1x1x128xf32>
    %348 = vector.shape_cast %347 : vector<1x1x128xf32> to vector<1x128xf32>
    %349 = vector.shape_cast %348 : vector<1x128xf32> to vector<1x1x128xf32>
    %350 = vector.broadcast %349 : vector<1x1x128xf32> to vector<1x16x128xf32>
    %351 = arith.mulf %350, %346 : vector<1x16x128xf32>
    %352 = arith.addf %345, %351 : vector<1x16x128xf32>
    %c104_i32 = arith.constant 104 : i32
    %353 = tpu.dynamic_rotate %352 by %c104_i32 dim 2 : vector<1x16x128xf32>, i32 -> vector<1x16x128xf32>
    %354 = arith.addf %352, %353 : vector<1x16x128xf32>
    %355 = arith.negf %354 : vector<1x16x128xf32>
    %356 = math.exp %355 : vector<1x16x128xf32>
    %cst_177 = arith.constant 1.000000e+00 : f32
    %357 = vector.broadcast %cst_177 : f32 to vector<1x16x128xf32>
    %358 = arith.addf %357, %356 : vector<1x16x128xf32>
    %359 = arith.divf %357, %358 : vector<1x16x128xf32>
    %c0_178 = arith.constant 0 : index
    %c0_179 = arith.constant 0 : index
    %c0_180 = arith.constant 0 : index
    %360 = vector.load %arg3[%c0_178, %c0_179, %c0_180] : memref<1x16x128xf32, #tpu.memory_space<vmem>>, vector<1x16x128xf32>
    tpu.vector_store %arg3[%c0_178, %c0_179, %c0_180], %359 {strides = array<i32>} : memref<1x16x128xf32, #tpu.memory_space<vmem>>, vector<1x16x128xf32>,
    return
  }
  func.func @transform_0(%arg0: i32) -> (i32, i32, i32) {
    %c0_i32 = arith.constant 0 : i32
    %c0_i32_0 = arith.constant 0 : i32
    %c0_i32_1 = arith.constant 0 : i32
    %c0_i32_2 = arith.constant 0 : i32
    return %c0_i32, %c0_i32_0, %c0_i32_1 : i32, i32, i32
  }
  func.func @transform_1(%arg0: i32) -> (i32, i32, i32, i32) {
    %c0_i32 = arith.constant 0 : i32
    %c0_i32_0 = arith.constant 0 : i32
    %c0_i32_1 = arith.constant 0 : i32
    %c0_i32_2 = arith.constant 0 : i32
    return %arg0, %c0_i32, %c0_i32_0, %c0_i32_1 : i32, i32, i32, i32
  }
  func.func @transform_2(%arg0: i32) -> (i32, i32, i32) {
    %c0_i32 = arith.constant 0 : i32
    %c0_i32_0 = arith.constant 0 : i32
    %c0_i32_1 = arith.constant 0 : i32
    return %arg0, %c0_i32, %c0_i32_0 : i32, i32, i32
  }
}

</mosaic_0001>

<bundles_post_ra>
// kernel: tpu_custom_call.1
= control target key start
LH: loop header
LB: loop body
LE: loop exit
PB: predicated region body
PF: predicated region fallthrough
CT: control target
= control target key end

     0   :  { %7 = vsyncpa [#allocation4], 0  ;;  %s2021_s0 = inlined_call_operand.hbm [shape: f32[49,1,128], index: 0, kind: input, shape index: {}]   ;;  %s2022_s1 = inlined_call_operand.hbm [shape: f32[2,4,16,16], index: 1, kind: input, shape index: {}]   ;;  %s2023_s2 = inlined_call_operand.hbm [shape: f32[2,16,128], index: 2, kind: output, shape index: {}]  }
   0x1   :  { %8 = vsyncpa [#allocation7], 0 }
   0x2   :  { %10 = vsyncpa [#allocation7 + $0x1], 0 }
   0x3   :  { %11 = vsyncpa [#allocation5], 0 }
   0x4   :  { %13 = vsyncpa [#allocation5 + $0x1], 0  ;;  %s1434_s9 = smov 0   ;;  %s1436_s10 = smov 0  }
   0x5   :  { %s1438_s11 = smov 0   ;;  %s1440_s12 = smov 0  }
   0x6 LB: > { %s1455_s13 = sadd.s32 4294967295, %s1403_s12   ;;  %s1130_s14 = sadd.s32 4294967294, %s1403_s12   ;;  %s1403_s12 = sphi %s1440_s12, %s2115_s12   ;;  %s1399_s11 = sphi %s1438_s11, %s2114_s11   ;;  %s1395_s10 = sphi %s1436_s10, %s2113_s10   ;;  %s1391_s9 = sphi %s1434_s9, %s2112_s9  }
   0x7   : > { %p60_p0 = scmp.ne.s32.totalorder %s1395_s10, %s1391_s9  ;;  %p2024_p1 = scmp.eq.s32.totalorder %s1455_s13, 0 }
   0x8   : > { %p90_p3 = scmp.eq.s32.totalorder %s1130_s14, 1  ;;  %p1131_p5 = scmp.ge.s32.totalorder %s1403_s12, 1 }
   0x9   : > { %p1464_p4 = por %p2024_p1, %p60_p0  ;;  %p97_p7 = scmp.lt.s32.totalorder %s1403_s12, 3 }
   0xa   : > { %p1469_p6 = por %p90_p3, %p60_p0  ;;  %s1405_s18 = smov [#allocation3]  }
   0xb   : > { %s2051_s15 = scalar_select %p1464_p4, 1, 0 }
   0xc   : > { %s2052_s16 = scalar_select %p1469_p6, 1, 0 }
   0xd   : > { %p1474_p8 = pnand %p1131_p5, %p97_p7  ;;  %s109_s19 = sshll.u32 %s1405_s18, 4  ;;  %s1478_s19 = int_to_ptr.vmem [resolvable:$true] %s109_s19 }
   0xe   : > { %s1490_s21 = sadd.s32 1, %s1403_s12   ;;  %s47_s22 = sadd.s32 1, %s1399_s11 }
   0xf   : > { %p1207_p9 = pneg %p1474_p8  ;;  %s44_s23 = ssub.s32 %s1403_s12, %s1490_s21 }
  0x10   : > { %s1275_s26 = scalar_lea.hbm %s2021_s0, 784 }
  0x11   : > { %p1485_p11 = pnand %p1207_p9, %p2024_p1  ;;  %p1276_p12 = scmp.ne.s32.totalorder %s2021_s0, %s1275_s26 }
  0x12   : > { %p1282_p5 = scmp.lt.u32.totalorder %s1275_s26, %s2021_s0 }
  0x13   : > { %p1277_p13 = pneg %p1485_p11 }
  0x15   : > { %p1278_p0 = pnand %p1277_p13, %p1276_p12 }
  0x17   : > { %p1279_p3 = pneg %p1278_p0 }
  0x19   : > { %p1284_p7 = pnand %p1282_p5, %p1279_p3 }
  0x1b   : > { %1287 = shalt.err (!%p1284_p7)
}
  0x1c   : > { %s1288_s3 = scalar_lea.vmem %s1478_s19, 784  ;;  %s1295_s4 = scalar_lea.vmem %s1478_s19, 800 }
  0x1d   : > { %p1289_p9 = scmp.ne.s32.totalorder %s1478_s19, %s1288_s3  ;;  %p1296_p2 = scmp.lt.s32.totalorder %s1478_s19, %s1478_s19 }
  0x1e   : > { %p1297_p6 = scmp.lt.s32.totalorder %s1295_s4, %s1288_s3 }
  0x1f   : > { %p1291_p10 = pnand %p1289_p9, %p1277_p13 }
  0x20   : > { %p1298_p12 = por %p1297_p6, %p1296_p2 }
  0x21   : > { %p1292_p1 = pneg %p1291_p10 }
  0x23   : > { %p1299_p0 = pnand %p1298_p12, %p1292_p1 }
  0x25   : > { %1302 = shalt.err (!%p1299_p0)
}
  0x26   : > { %s1406_s5 = smov 16   ;;  %s1407_s6 = smov 1  }
  0x27   : > { %1210 = dma.hbm_to_vmem [thread:$0]  (!%p1485_p11), %s2021_s0, 784, %s1478_s19, [#allocation4], %s1406_s5, %s1406_s5, %s1407_s6  }
  0x28   : > { %p45_p2 = scmp.eq.s32.totalorder %s44_s23, 0  ;;  %p54_p1 = scmp.ne.s32.totalorder %s1399_s11, %s1395_s10 }
  0x29   : > { %p55_p6 = scmp.eq.s32.totalorder %s1403_s12, 0  ;;  %p1220_p10 = scmp.lt.s32.totalorder %s1403_s12, 2 }
  0x2a   : > { %s1522_s14 = scalar_select %p45_p2, %s1399_s11, %s47_s22  }
  0x2b   : > { %p56_p13 = por %p55_p6, %p54_p1  ;;  %p2055_p3 = scmp.eq.s32.totalorder %s1455_s13, 1 }
  0x2c   : > { %s123_s24 = sand.u32 1, %s1399_s11   ;;  %s1197_s25 = sshll.u32 %s1403_s12, 10 }
  0x2d   : > { %p1526_p5 = por %p2055_p3, %p54_p1  ;;  %s1134_s26 = sshll.u32 %s123_s24, 6 }
  0x2e   : > { %s1535_s28 = scalar_lea.hbm %s2022_s1, %s1197_s25  ;;  %s127_s19 = scalar_lea.vmem [#allocation6], %s1134_s26 }
  0x2f   : > { %s2056_s18 = scalar_select %p1526_p5, 1, 0 }
  0x30   : > { %s134_s22 = sshll.u32 %s127_s19, 4  ;;  %p1537_p11 = pnand %p1220_p10, %p56_p13  ;;  %s1541_s22 = int_to_ptr.vmem [resolvable:$true] %s134_s22 }
  0x31   : > { %s1543_s29 = scalar_lea.sflag [#allocation7], %s123_s24  ;;  %s1303_s30 = scalar_lea.hbm %s1535_s28, 1024 }
  0x32   : > { %p1304_p7 = scmp.ne.s32.totalorder %s1535_s28, %s1303_s30  ;;  %p1305_p9 = pneg %p1537_p11 }
  0x33   : > { %s1308_s5 = scalar_lea.hbm %s2022_s1, 2048  ;;  %p1309_p2 = scmp.lt.u32.totalorder %s1535_s28, %s2022_s1 }
  0x34   : > { %p1306_p12 = pnand %p1305_p9, %p1304_p7  ;;  %p1310_p1 = scmp.lt.u32.totalorder %s1308_s5, %s1303_s30 }
  0x35   : > { %p1312_p10 = scmp.lt.u32.totalorder %s1303_s30, %s1535_s28 }
  0x36   : > { %p1307_p0 = pneg %p1306_p12  ;;  %p1311_p6 = por %p1310_p1, %p1309_p2 }
  0x38   : > { %p1313_p13 = por %p1312_p10, %p1311_p6 }
  0x3a   : > { %p1314_p3 = pnand %p1313_p13, %p1307_p0 }
  0x3c   : > { %1317 = shalt.err (!%p1314_p3)
}
  0x3d   : > { %s1318_s8 = scalar_lea.vmem %s1541_s22, 1024  ;;  %s1408_s24 = smov [#allocation6]  }
  0x3e   : > { %p1319_p7 = scmp.ne.s32.totalorder %s1541_s22, %s1318_s8  ;;  %s1323_s25 = sshll.u32 %s1408_s24, 4  ;;  %s1324_s25 = int_to_ptr.vmem [resolvable:$false] %s1323_s25 }
  0x3f   : > { %s1325_s26 = scalar_lea.vmem %s1324_s25, 2048  ;;  %p1326_p4 = scmp.lt.s32.totalorder %s1541_s22, %s1324_s25 }
  0x40   : > { %p1321_p12 = pnand %p1319_p7, %p1305_p9  ;;  %p1327_p2 = scmp.lt.s32.totalorder %s1325_s26, %s1318_s8 }
  0x42   : > { %p1322_p5 = pneg %p1321_p12  ;;  %p1328_p1 = por %p1327_p2, %p1326_p4 }
  0x44   : > { %p1329_p6 = pnand %p1328_p1, %p1322_p5 }
  0x46   : > { %1332 = shalt.err (!%p1329_p6)
}
  0x47   : > { %s1409_s20 = smov 128   ;;  %s1410_s27 = smov 8  }
  0x48   : > { %1214 = dma.hbm_to_vmem [thread:$0]  (!%p1537_p11), %s1535_s28, 1024, %s1541_s22, %s1543_s29, %s1409_s20, %s1409_s20, %s1410_s27  }
  0x49   : > { %146 = sbr.rel (%p1474_p8) target bundleno = 1210 (0x4ba), region = 28 }
  0x50   : > { %p2058_p9 = scmp.eq.s32.totalorder %s1455_s13, 0 }
  0x52   : > { %1378 = dma.done.wait (%p2058_p9), [#allocation4], 784   ;;  %p2059_p0 = pmov %p2058_p9 }
  0x53   : > { %s1578_s19 = sand.u32 1, %s1395_s10   ;;  %p2060_p4 = scmp.ne.s32.totalorder %s2051_s15, 0 }
  0x54   : > { %1380 = vsyncadd (%p2059_p0), [#allocation4], 4294966512  ;;  %s1139_s30 = sshll.u32 %s1578_s19, 6  ;;  %s153_s3 = scalar_lea.sflag [#allocation7], %s1578_s19 }
  0x55   : > { %s156_s4 = scalar_lea.vmem [#allocation6], %s1139_s30 }
  0x56   : > { %1382 = dma.done.wait (%p2060_p4), %s153_s3, 1024  }
  0x57   : > { %1384 = vsyncadd (%p2060_p4), %s153_s3, 4294966272  ;;  %v1411_v0 = vmov 0.0   ;;  %vm185_vm0 = vcmask 130048   ;;  %v177_v1 = vld [vmem:[%s156_s4] sm:$0xff]  ;;  %v179_v2 = vld [vmem:[%s156_s4 + $0x10] sm:$0xff]  ;;  %s1412_s15 = smov 27  }
  0x58   : > { %217 = vst [vmem:[#allocation2] sm:$0xff] %v1411_v0  ;;  %218 = vst [vmem:[#allocation2 + $0x8] sm:$0xff] %v1411_v0  ;;  %v181_v3 = vld [vmem:[%s156_s4 + $0x20] sm:$0xff]  ;;  %v183_v4 = vld [vmem:[%s156_s4 + $0x30] sm:$0xff]  ;;  %v186_v5 = vsel %vm185_vm0, %v177_v1, 0.0  ;;  %v187_v6 = vsel %vm185_vm0, %v179_v2, 0.0 }
  0x59   : > { %219 = vst [vmem:[#allocation2 + $0x10] sm:$0x3f] %v1411_v0  ;;  %v189_v7 = vsel %vm185_vm0, %v181_v3, 0.0  ;;  %v203_v8 = vsel %vm185_vm0, %v177_v1, -inf  ;;  %v178_v9 = vld [vmem:[%s156_s4 + $0x8] sm:$0xff]  ;;  %v188_v10 = vadd.f32 %v187_v6, %v186_v5  ;;  %v191_v11 = vsel %vm185_vm0, %v183_v4, 0.0 }
  0x5a   : > { %v204_v12 = vsel %vm185_vm0, %v179_v2, -inf  ;;  %v205_v13 = vsel %vm185_vm0, %v181_v3, -inf  ;;  %v180_v14 = vld [vmem:[%s156_s4 + $0x18] sm:$0xff]  ;;  %v182_v15 = vld [vmem:[%s156_s4 + $0x28] sm:$0xff]  ;;  %v207_v18 = vsel %vm185_vm0, %v183_v4, -inf  ;;  %v193_v19 = vsel %vm185_vm0, %v178_v9, 0.0 }
  0x5b   : > { %v184_v16 = vld [vmem:[%s156_s4 + $0x38] sm:$0xff]  ;;  %v206_v17 = vmax.f32 %v203_v8, %v205_v13  ;;  %v194_v20 = vsel %vm185_vm0, %v180_v14, 0.0  ;;  %v190_v21 = vadd.f32 %v189_v7, %v188_v10  ;;  %v208_v22 = vmax.f32 %v204_v12, %v207_v18  ;;  %s1413_s17 = smov 3   ;;  %s1414_s28 = smov 127   ;;  %v1141_v53 = vld [vmem:[#allocation3] ss:$0 sm:$0xff] }
  0x5c   : > { %v195_v23 = vadd.f32 %v194_v20, %v193_v19  ;;  %v196_v24 = vsel %vm185_vm0, %v182_v15, 0.0  ;;  %v198_v25 = vsel %vm185_vm0, %v184_v16, 0.0  ;;  %v210_v26 = vsel %vm185_vm0, %v178_v9, -inf  ;;  %v1142_v54 = vld [vmem:[#allocation3 + $0x1] ss:$0 sm:$0xff]  ;;  %s1415_s22 = smov 104  }
  0x5d   : > { %v211_v27 = vsel %vm185_vm0, %v180_v14, -inf  ;;  %v212_v28 = vsel %vm185_vm0, %v182_v15, -inf  ;;  %v192_v29 = vadd.f32 %v191_v11, %v190_v21  ;;  %v209_v30 = vmax.f32 %v206_v17, %v208_v22  ;;  %v1143_v11 = vld [vmem:[#allocation3 + $0x2] ss:$0 sm:$0xff]  ;;  %s1140_s23 = sshll.u32 %s1578_s19, 4  ;;  %s1198_s29 = sshll.u32 %s1455_s13, 8 }
  0x5e   : > { %v197_v31 = vadd.f32 %v196_v24, %v195_v23  ;;  %v213_v32 = vmax.f32 %v210_v26, %v212_v28  ;;  %v214_v33 = vsel %vm185_vm0, %v184_v16, -inf  ;;  %vm228_vm1 = vcmask 154648   ;;  %s176_s5 = scalar_lea.vmem [#allocation8], %s1140_s23  ;;  %s1975_s24 = scalar_lea.hbm %s2023_s2, %s1198_s29 }
  0x5f   : > { %v201_v34 = vmul.f32 0.25, %v192_v29  ;;  %233 = vrot.lane.b32.xlu1 %v209_v30, %s1412_s15  ;;  %v215_v36 = vmax.f32 %v211_v27, %v214_v33  ;;  %vm239_vm2 = vcmask 351448   ;;  %v1144_v30 = vld [vmem:[#allocation3 + $0x3] ss:$0 sm:$0xff]  ;;  %s1045_s6 = sshll.u32 %s176_s5, 4  ;;  %s1032_s25 = scalar_lea.sflag [#allocation5], %s1578_s19  ;;  %s1977_s6 = int_to_ptr.vmem [resolvable:$true] %s1045_s6 }
  0x60   : > { %v199_v35 = vadd.f32 %v198_v25, %v197_v31  ;;  %s1333_s26 = scalar_lea.vmem %s1977_s6, 256  ;;  %p2109_p5 = scmp.ne.s32.totalorder %s2056_s18, 0 }
  0x61   : > { %222 = vrot.lane.b32.xlu0 %v201_v34, %s1413_s17  ;;  %v216_v38 = vmax.f32 %v213_v32, %v215_v36  ;;  %p1334_p8 = scmp.ne.s32.totalorder %s1977_s6, %s1333_s26  ;;  %s1416_s13 = smov [#allocation8]  }
  0x62   : > { %v202_v37 = vmul.f32 0.25, %v199_v35  ;;  %s1337_s20 = sshll.u32 %s1416_s13, 4  ;;  %s1338_s20 = int_to_ptr.vmem [resolvable:$false] %s1337_s20 }
  0x63   : > { %235 = vrot.lane.b32.xlu1 %v216_v38, %s1412_s15  ;;  %p1335_p11 = pnand %p1334_p8, %p2109_p5  ;;  %s1339_s27 = scalar_lea.vmem %s1338_s20, 512 }
  0x64   : > { %p1340_p13 = scmp.lt.s32.totalorder %s1977_s6, %s1338_s20  ;;  %p1341_p3 = scmp.lt.s32.totalorder %s1339_s27, %s1333_s26 }
  0x65   : > { %224 = vrot.lane.b32.xlu0 %v202_v37, %s1413_s17  ;;  %p1336_p10 = pneg %p1335_p11 }
  0x66   : > { %p1342_p7 = por %p1341_p3, %p1340_p13 }
  0x68   : > { %p1343_p12 = pnand %p1342_p7, %p1336_p10 }
  0xd1   : > { %v234_v39 = vpop.permute.xlu1 %233 }
  0xd3   : > { %v223_v40 = vpop.permute.xlu0 %222 }
  0xd4   : > { %229 = vst.msk [vmem:[#allocation2 + $0x3] sm:$0xff] %vm228_vm1, %v223_v40 }
  0xd5   : > { %240 = vst.msk [vmem:[#allocation2 + $0x3] sm:$0xff] %vm239_vm2, %v234_v39  ;;  %v236_v41 = vpop.permute.xlu1 %235 }
  0xd7   : > { %v225_v42 = vpop.permute.xlu0 %224 }
  0xd8   : > { %230 = vst.msk [vmem:[#allocation2 + $0xb] sm:$0xff] %vm228_vm1, %v225_v42 }
  0xd9   : > { %241 = vst.msk [vmem:[#allocation2 + $0xb] sm:$0xff] %vm239_vm2, %v236_v41 }
  0xdc   : > { %v242_v43 = vld [vmem:[#allocation2] sm:$0xff] }
  0xdd   : > { %255 = vrot.lane.b32.xlu0 %v242_v43, %s1414_s28  ;;  %v1603_v44 = vld [vmem:[#allocation2 + $0x1] sm:$0xff]  ;;  %v251_v56 = vmul.f32 %v1141_v53, %v242_v43 }
  0xde   : > { %v1608_v46 = vld [vmem:[#allocation2 + $0x2] sm:$0xff] }
  0xdf   : > { %v1616_v48 = vld [vmem:[#allocation2 + $0x3] sm:$0xff] }
  0xe0   : > { %v243_v45 = vld [vmem:[#allocation2 + $0x8] sm:$0xff] }
  0xe1   : > { %365 = vrot.lane.b32.xlu0 %v1603_v44, %s1414_s28  ;;  %257 = vrot.lane.b32.xlu1 %v243_v45, %s1414_s28  ;;  %v1610_v47 = vld [vmem:[#allocation2 + $0x9] sm:$0xff]  ;;  %v252_v61 = vmul.f32 %v1141_v53, %v243_v45 }
  0xe2   : > { %v1618_v49 = vld [vmem:[#allocation2 + $0xa] sm:$0xff] }
  0xe3   : > { %v1624_v50 = vld [vmem:[#allocation2 + $0x4] sm:$0xff]  ;;  %v1632_v52 = vld [vmem:[#allocation2 + $0xc] sm:$0xff] }
  0xe4   : > { %v1626_v51 = vld [vmem:[#allocation2 + $0xb] sm:$0xff] }
  0xe5   : > { %475 = vrot.lane.b32.xlu0 %v1608_v46, %s1414_s28  ;;  %367 = vrot.lane.b32.xlu1 %v1610_v47, %s1414_s28  ;;  %v1637_v60 = vld [vmem:[#allocation2 + $0x5] sm:$0xff]  ;;  %v1644_v1 = vld [vmem:[#allocation2 + $0xd] sm:$0xff] }
  0xe6   : > { %2061 = vst [vmem:[#allocation12_spill] sm:$0xff] %v1637_v60  ;;  %2062 = vst [vmem:[#allocation13_spill] sm:$0xff] %v1644_v1  ;;  %v1654_v4 = vld [vmem:[#allocation2 + $0x6] sm:$0xff]  ;;  %v1662_v6 = vld [vmem:[#allocation2 + $0xe] sm:$0xff] }
  0xe7   : > { %2063 = vst [vmem:[#allocation14_spill] sm:$0xff] %v1654_v4  ;;  %2064 = vst [vmem:[#allocation15_spill] sm:$0xff] %v1662_v6 }
  0xe9   : > { %585 = vrot.lane.b32.xlu0 %v1616_v48, %s1414_s28  ;;  %477 = vrot.lane.b32.xlu1 %v1618_v49, %s1414_s28 }
  0xed   : > { %695 = vrot.lane.b32.xlu0 %v1624_v50, %s1414_s28  ;;  %587 = vrot.lane.b32.xlu1 %v1626_v51, %s1414_s28 }
  0xf1   : > { %697 = vrot.lane.b32.xlu1 %v1632_v52, %s1414_s28 }
 0x14f   : > { %v256_v55 = vpop.permute.xlu0 %255 }
 0x150   : > { %v267_v57 = vmul.f32 %v1142_v54, %v256_v55  ;;  %271 = vrot.lane.b32.xlu0 %v256_v55, %s1414_s28 }
 0x152   : > { %v269_v58 = vadd.f32 %v267_v57, %v251_v56  ;;  %v1145_v57 = vld [vmem:[#allocation3 + $0x4] ss:$0 sm:$0xff] }
 0x153   : > { %v258_v59 = vpop.permute.xlu1 %257  ;;  %v1642_v63 = vpop.permute.xlu0 %365 }
 0x154   : > { %v268_v62 = vmul.f32 %v1142_v54, %v258_v59  ;;  %273 = vrot.lane.b32.xlu1 %v258_v59, %s1414_s28  ;;  %805 = vrot.lane.b32.xlu0 %v1637_v60, %s1414_s28 }
 0x156   : > { %v270_v0 = vadd.f32 %v268_v62, %v252_v61 }
 0x157   : > { %v1650_v2 = vpop.permute.xlu1 %367  ;;  %v1652_v3 = vpop.permute.xlu0 %475 }
 0x158   : > { %807 = vrot.lane.b32.xlu1 %v1644_v1, %s1414_s28  ;;  %381 = vrot.lane.b32.xlu0 %v1642_v63, %s1414_s28 }
 0x15b   : > { %v1660_v5 = vpop.permute.xlu1 %477  ;;  %v1668_v7 = vpop.permute.xlu0 %585 }
 0x15c   : > { %383 = vrot.lane.b32.xlu1 %v1650_v2, %s1414_s28  ;;  %915 = vrot.lane.b32.xlu0 %v1654_v4, %s1414_s28 }
 0x15f   : > { %v1674_v8 = vpop.permute.xlu1 %587  ;;  %v1676_v9 = vpop.permute.xlu0 %695 }
 0x160   : > { %917 = vrot.lane.b32.xlu1 %v1662_v6, %s1414_s28  ;;  %491 = vrot.lane.b32.xlu0 %v1652_v3, %s1414_s28  ;;  %v1148_v6 = vld [vmem:[#allocation3 + $0x7] ss:$0 sm:$0xff] }
 0x161   : > { %v362_v60 = vmul.f32 %v1148_v6, %v1610_v47 }
 0x163   : > { %v1682_v10 = vpop.permute.xlu1 %697 }
 0x164   : > { %493 = vrot.lane.b32.xlu1 %v1660_v5, %s1414_s28  ;;  %601 = vrot.lane.b32.xlu0 %v1668_v7, %s1414_s28 }
 0x168   : > { %603 = vrot.lane.b32.xlu1 %v1674_v8, %s1414_s28  ;;  %711 = vrot.lane.b32.xlu0 %v1676_v9, %s1414_s28 }
 0x16c   : > { %713 = vrot.lane.b32.xlu1 %v1682_v10, %s1414_s28 }
 0x1c2   : > { %v272_v12 = vpop.permute.xlu0 %271 }
 0x1c3   : > { %v283_v13 = vmul.f32 %v1143_v11, %v272_v12  ;;  %287 = vrot.lane.b32.xlu0 %v272_v12, %s1414_s28 }
 0x1c5   : > { %v285_v14 = vadd.f32 %v283_v13, %v269_v58 }
 0x1c6   : > { %v274_v15 = vpop.permute.xlu1 %273  ;;  %v1687_v16 = vpop.permute.xlu0 %805 }
 0x1c7   : > { %2065 = vst [vmem:[#allocation16_spill] sm:$0xff] %v1687_v16  ;;  %v284_v17 = vmul.f32 %v1143_v11, %v274_v15  ;;  %289 = vrot.lane.b32.xlu1 %v274_v15, %s1414_s28  ;;  %821 = vrot.lane.b32.xlu0 %v1687_v16, %s1414_s28 }
 0x1c9   : > { %v286_v18 = vadd.f32 %v284_v17, %v270_v0 }
 0x1ca   : > { %v1692_v19 = vpop.permute.xlu1 %807  ;;  %v1694_v20 = vpop.permute.xlu0 %381 }
 0x1cb   : > { %2066 = vst [vmem:[#allocation17_spill] sm:$0xff] %v1692_v19  ;;  %823 = vrot.lane.b32.xlu1 %v1692_v19, %s1414_s28  ;;  %397 = vrot.lane.b32.xlu0 %v1694_v20, %s1414_s28 }
 0x1ce   : > { %v1700_v21 = vpop.permute.xlu1 %383  ;;  %v1702_v22 = vpop.permute.xlu0 %915 }
 0x1cf   : > { %2067 = vst [vmem:[#allocation18_spill] sm:$0xff] %v1702_v22  ;;  %399 = vrot.lane.b32.xlu1 %v1700_v21, %s1414_s28  ;;  %931 = vrot.lane.b32.xlu0 %v1702_v22, %s1414_s28 }
 0x1d2   : > { %v1708_v23 = vpop.permute.xlu1 %917  ;;  %v1710_v24 = vpop.permute.xlu0 %491 }
 0x1d3   : > { %2068 = vst [vmem:[#allocation19_spill] sm:$0xff] %v1708_v23  ;;  %933 = vrot.lane.b32.xlu1 %v1708_v23, %s1414_s28  ;;  %507 = vrot.lane.b32.xlu0 %v1710_v24, %s1414_s28 }
 0x1d6   : > { %v1716_v25 = vpop.permute.xlu1 %493  ;;  %v1718_v26 = vpop.permute.xlu0 %601 }
 0x1d7   : > { %509 = vrot.lane.b32.xlu1 %v1716_v25, %s1414_s28  ;;  %617 = vrot.lane.b32.xlu0 %v1718_v26, %s1414_s28 }
 0x1da   : > { %v1724_v27 = vpop.permute.xlu1 %603  ;;  %v1726_v28 = vpop.permute.xlu0 %711 }
 0x1db   : > { %619 = vrot.lane.b32.xlu1 %v1724_v27, %s1414_s28  ;;  %727 = vrot.lane.b32.xlu0 %v1726_v28, %s1414_s28 }
 0x1de   : > { %v1732_v29 = vpop.permute.xlu1 %713 }
 0x1df   : > { %729 = vrot.lane.b32.xlu1 %v1732_v29, %s1414_s28 }
 0x235   : > { %v288_v31 = vpop.permute.xlu0 %287 }
 0x236   : > { %v299_v32 = vmul.f32 %v1144_v30, %v288_v31  ;;  %303 = vrot.lane.b32.xlu0 %v288_v31, %s1414_s28 }
 0x238   : > { %v301_v33 = vadd.f32 %v299_v32, %v285_v14 }
 0x239   : > { %v290_v34 = vpop.permute.xlu1 %289  ;;  %v1737_v35 = vpop.permute.xlu0 %821 }
 0x23a   : > { %2069 = vst [vmem:[#allocation20_spill] sm:$0xff] %v1737_v35  ;;  %v300_v36 = vmul.f32 %v1144_v30, %v290_v34  ;;  %305 = vrot.lane.b32.xlu1 %v290_v34, %s1414_s28  ;;  %837 = vrot.lane.b32.xlu0 %v1737_v35, %s1414_s28 }
 0x23c   : > { %v302_v37 = vadd.f32 %v300_v36, %v286_v18 }
 0x23d   : > { %v1742_v38 = vpop.permute.xlu1 %823  ;;  %v1744_v39 = vpop.permute.xlu0 %397 }
 0x23e   : > { %2070 = vst [vmem:[#allocation21_spill] sm:$0xff] %v1742_v38  ;;  %839 = vrot.lane.b32.xlu1 %v1742_v38, %s1414_s28  ;;  %413 = vrot.lane.b32.xlu0 %v1744_v39, %s1414_s28  ;;  %v1150_v38 = vld [vmem:[#allocation3 + $0x9] ss:$0 sm:$0xff] }
 0x23f   : > { %v394_v47 = vmul.f32 %v1150_v38, %v1700_v21 }
 0x241   : > { %v1750_v40 = vpop.permute.xlu1 %399  ;;  %v1752_v41 = vpop.permute.xlu0 %931 }
 0x242   : > { %2071 = vst [vmem:[#allocation22_spill] sm:$0xff] %v1752_v41  ;;  %415 = vrot.lane.b32.xlu1 %v1750_v40, %s1414_s28  ;;  %947 = vrot.lane.b32.xlu0 %v1752_v41, %s1414_s28  ;;  %v1147_v41 = vld [vmem:[#allocation3 + $0x6] ss:$0 sm:$0xff] }
 0x245   : > { %v1758_v42 = vpop.permute.xlu1 %933  ;;  %v1760_v43 = vpop.permute.xlu0 %507 }
 0x246   : > { %2072 = vst [vmem:[#allocation23_spill] sm:$0xff] %v1758_v42  ;;  %949 = vrot.lane.b32.xlu1 %v1758_v42, %s1414_s28  ;;  %523 = vrot.lane.b32.xlu0 %v1760_v43, %s1414_s28 }
 0x249   : > { %v1766_v45 = vpop.permute.xlu1 %509  ;;  %v1768_v53 = vpop.permute.xlu0 %617 }
 0x24a   : > { %525 = vrot.lane.b32.xlu1 %v1766_v45, %s1414_s28  ;;  %633 = vrot.lane.b32.xlu0 %v1768_v53, %s1414_s28 }
 0x24d   : > { %v1774_v54 = vpop.permute.xlu1 %619  ;;  %v1776_v55 = vpop.permute.xlu0 %727 }
 0x24e   : > { %635 = vrot.lane.b32.xlu1 %v1774_v54, %s1414_s28  ;;  %743 = vrot.lane.b32.xlu0 %v1776_v55, %s1414_s28 }
 0x251   : > { %v1782_v56 = vpop.permute.xlu1 %729 }
 0x252   : > { %2073 = vst [vmem:[#allocation24_spill] sm:$0xff] %v1782_v56  ;;  %745 = vrot.lane.b32.xlu1 %v1782_v56, %s1414_s28 }
 0x2a8   : > { %v304_v58 = vpop.permute.xlu0 %303 }
 0x2a9   : > { %v315_v59 = vmul.f32 %v1145_v57, %v304_v58  ;;  %319 = vrot.lane.b32.xlu0 %v304_v58, %s1414_s28 }
 0x2ab   : > { %v317_v61 = vadd.f32 %v315_v59, %v301_v33 }
 0x2ac   : > { %v306_v62 = vpop.permute.xlu1 %305  ;;  %v1787_v0 = vpop.permute.xlu0 %837 }
 0x2ad   : > { %2074 = vst [vmem:[#allocation25_spill] sm:$0xff] %v1787_v0  ;;  %v316_v11 = vmul.f32 %v1145_v57, %v306_v62  ;;  %321 = vrot.lane.b32.xlu1 %v306_v62, %s1414_s28  ;;  %853 = vrot.lane.b32.xlu0 %v1787_v0, %s1414_s28 }
 0x2af   : > { %v318_v12 = vadd.f32 %v316_v11, %v302_v37  ;;  %v1146_v37 = vld [vmem:[#allocation3 + $0x5] ss:$0 sm:$0xff] }
 0x2b0   : > { %v1792_v13 = vpop.permute.xlu1 %839  ;;  %v1794_v14 = vpop.permute.xlu0 %413 }
 0x2b1   : > { %2075 = vst [vmem:[#allocation26_spill] sm:$0xff] %v1792_v13  ;;  %855 = vrot.lane.b32.xlu1 %v1792_v13, %s1414_s28  ;;  %429 = vrot.lane.b32.xlu0 %v1794_v14, %s1414_s28  ;;  %v361_v13 = vmul.f32 %v1148_v6, %v1603_v44  ;;  %v1152_v44 = vld [vmem:[#allocation3 + $0xb] ss:$0 sm:$0xff] }
 0x2b2   : > { %v425_v6 = vmul.f32 %v1152_v44, %v1794_v14 }
 0x2b4   : > { %v1800_v15 = vpop.permute.xlu1 %415  ;;  %v1802_v17 = vpop.permute.xlu0 %947 }
 0x2b5   : > { %2076 = vst [vmem:[#allocation27_spill] sm:$0xff] %v1802_v17  ;;  %431 = vrot.lane.b32.xlu1 %v1800_v15, %s1414_s28  ;;  %963 = vrot.lane.b32.xlu0 %v1802_v17, %s1414_s28 }
 0x2b8   : > { %v1808_v18 = vpop.permute.xlu1 %949  ;;  %v1810_v30 = vpop.permute.xlu0 %523 }
 0x2b9   : > { %2077 = vst [vmem:[#allocation28_spill] sm:$0xff] %v1808_v18  ;;  %965 = vrot.lane.b32.xlu1 %v1808_v18, %s1414_s28  ;;  %539 = vrot.lane.b32.xlu0 %v1810_v30, %s1414_s28 }
 0x2bc   : > { %v1816_v31 = vpop.permute.xlu1 %525  ;;  %v1818_v32 = vpop.permute.xlu0 %633 }
 0x2bd   : > { %541 = vrot.lane.b32.xlu1 %v1816_v31, %s1414_s28  ;;  %649 = vrot.lane.b32.xlu0 %v1818_v32, %s1414_s28 }
 0x2c0   : > { %v1824_v33 = vpop.permute.xlu1 %635  ;;  %v1826_v34 = vpop.permute.xlu0 %743 }
 0x2c1   : > { %651 = vrot.lane.b32.xlu1 %v1824_v33, %s1414_s28  ;;  %759 = vrot.lane.b32.xlu0 %v1826_v34, %s1414_s28 }
 0x2c4   : > { %v1832_v36 = vpop.permute.xlu1 %745 }
 0x2c5   : > { %2078 = vst [vmem:[#allocation29_spill] sm:$0xff] %v1832_v36  ;;  %761 = vrot.lane.b32.xlu1 %v1832_v36, %s1414_s28 }
 0x31b   : > { %v320_v57 = vpop.permute.xlu0 %319 }
 0x31c   : > { %v331_v58 = vmul.f32 %v1146_v37, %v320_v57  ;;  %335 = vrot.lane.b32.xlu0 %v320_v57, %s1414_s28 }
 0x31e   : > { %v333_v59 = vadd.f32 %v331_v58, %v317_v61 }
 0x31f   : > { %v322_v62 = vpop.permute.xlu1 %321  ;;  %v1837_v11 = vpop.permute.xlu0 %853 }
 0x320   : > { %2079 = vst [vmem:[#allocation30_spill] sm:$0xff] %v1837_v11  ;;  %v332_v18 = vmul.f32 %v1146_v37, %v322_v62  ;;  %337 = vrot.lane.b32.xlu1 %v322_v62, %s1414_s28  ;;  %869 = vrot.lane.b32.xlu0 %v1837_v11, %s1414_s28 }
 0x322   : > { %v334_v42 = vadd.f32 %v332_v18, %v318_v12 }
 0x323   : > { %v1842_v17 = vpop.permute.xlu1 %855  ;;  %v430_v23 = vpop.permute.xlu0 %429 }
 0x324   : > { %2080 = vst [vmem:[#allocation31_spill] sm:$0xff] %v1842_v17  ;;  %871 = vrot.lane.b32.xlu1 %v1842_v17, %s1414_s28  ;;  %445 = vrot.lane.b32.xlu0 %v430_v23, %s1414_s28  ;;  %v1149_v17 = vld [vmem:[#allocation3 + $0x8] ss:$0 sm:$0xff] }
 0x325   : > { %v377_v35 = vmul.f32 %v1149_v17, %v1642_v63  ;;  %v378_v56 = vmul.f32 %v1149_v17, %v1650_v2 }
 0x327   : > { %v1847_v57 = vpop.permute.xlu1 %431  ;;  %v1849_v61 = vpop.permute.xlu0 %963 }
 0x328   : > { %2081 = vst [vmem:[#allocation32_spill] sm:$0xff] %v1849_v61  ;;  %447 = vrot.lane.b32.xlu1 %v1847_v57, %s1414_s28  ;;  %979 = vrot.lane.b32.xlu0 %v1849_v61, %s1414_s28 }
 0x32b   : > { %v1855_v37 = vpop.permute.xlu1 %965  ;;  %v1857_v12 = vpop.permute.xlu0 %539 }
 0x32c   : > { %2082 = vst [vmem:[#allocation33_spill] sm:$0xff] %v1855_v37  ;;  %981 = vrot.lane.b32.xlu1 %v1855_v37, %s1414_s28  ;;  %555 = vrot.lane.b32.xlu0 %v1857_v12, %s1414_s28 }
 0x32f   : > { %v1863_v18 = vpop.permute.xlu1 %541  ;;  %v1865_v58 = vpop.permute.xlu0 %649 }
 0x330   : > { %557 = vrot.lane.b32.xlu1 %v1863_v18, %s1414_s28  ;;  %665 = vrot.lane.b32.xlu0 %v1865_v58, %s1414_s28 }
 0x333   : > { %v1871_v62 = vpop.permute.xlu1 %651  ;;  %v1873_v61 = vpop.permute.xlu0 %759 }
 0x334   : > { %2083 = vst [vmem:[#allocation34_spill] sm:$0xff] %v1873_v61  ;;  %667 = vrot.lane.b32.xlu1 %v1871_v62, %s1414_s28  ;;  %775 = vrot.lane.b32.xlu0 %v1873_v61, %s1414_s28 }
 0x337   : > { %v1879_v37 = vpop.permute.xlu1 %761 }
 0x338   : > { %2084 = vst [vmem:[#allocation35_spill] sm:$0xff] %v1879_v37  ;;  %777 = vrot.lane.b32.xlu1 %v1879_v37, %s1414_s28  ;;  %v1151_v37 = vld [vmem:[#allocation3 + $0xa] ss:$0 sm:$0xff] }
 0x339   : > { %v409_v63 = vmul.f32 %v1151_v37, %v1744_v39  ;;  %v410_v2 = vmul.f32 %v1151_v37, %v1750_v40  ;;  %v1157_v37 = vld [vmem:[#allocation3 + $0x10] ss:$0 sm:$0xff] }
 0x38e   : > { %v336_v22 = vpop.permute.xlu0 %335 }
 0x38f   : > { %v347_v4 = vmul.f32 %v1147_v41, %v336_v22  ;;  %v393_v22 = vmul.f32 %v1150_v38, %v1694_v20  ;;  %v1154_v20 = vld [vmem:[#allocation3 + $0xd] ss:$0 sm:$0xff] }
 0x391   : > { %v349_v11 = vadd.f32 %v347_v4, %v333_v59 }
 0x392   : > { %v338_v0 = vpop.permute.xlu1 %337  ;;  %v1884_v19 = vpop.permute.xlu0 %869 }
 0x393   : > { %v363_v1 = vadd.f32 %v361_v13, %v349_v11  ;;  %v348_v16 = vmul.f32 %v1147_v41, %v338_v0  ;;  %885 = vrot.lane.b32.xlu0 %v1884_v19, %s1414_s28  ;;  %v1153_v0 = vld [vmem:[#allocation3 + $0xc] ss:$0 sm:$0xff]  ;;  %v426_v11 = vmul.f32 %v1152_v44, %v1800_v15 }
 0x394   : > { %v441_v17 = vmul.f32 %v1153_v0, %v430_v23 }
 0x395   : > { %v379_v36 = vadd.f32 %v377_v35, %v363_v1  ;;  %v350_v61 = vadd.f32 %v348_v16, %v334_v42 }
 0x396   : > { %v1891_v4 = vpop.permute.xlu1 %871  ;;  %v446_v59 = vpop.permute.xlu0 %445 }
 0x397   : > { %v395_v13 = vadd.f32 %v393_v22, %v379_v36  ;;  %v364_v41 = vadd.f32 %v362_v60, %v350_v61  ;;  %887 = vrot.lane.b32.xlu1 %v1891_v4, %s1414_s28  ;;  %v1155_v60 = vld [vmem:[#allocation3 + $0xe] ss:$0 sm:$0xff]  ;;  %v457_v38 = vmul.f32 %v1154_v20, %v446_v59  ;;  %v1158_v59 = vld [vmem:[#allocation3 + $0x11] ss:$0 sm:$0xff] }
 0x398   : > { %v471_v22 = vmul.f32 %v1155_v60, %v1608_v46 }
 0x399   : > { %v380_v1 = vadd.f32 %v378_v56, %v364_v41  ;;  %v411_v16 = vadd.f32 %v409_v63, %v395_v13  ;;  %v1156_v56 = vld [vmem:[#allocation3 + $0xf] ss:$0 sm:$0xff]  ;;  %v442_v63 = vmul.f32 %v1153_v0, %v1847_v57  ;;  %v519_v0 = vmul.f32 %v1158_v59, %v1760_v43 }
 0x39a   : > { %v448_v35 = vpop.permute.xlu1 %447  ;;  %v1899_v42 = vpop.permute.xlu0 %979  ;;  %v487_v13 = vmul.f32 %v1156_v56, %v1652_v3  ;;  %v488_v57 = vmul.f32 %v1156_v56, %v1660_v5  ;;  %v504_v3 = vmul.f32 %v1157_v37, %v1716_v25  ;;  %v1162_v5 = vld [vmem:[#allocation3 + $0x15] ss:$0 sm:$0xff] }
 0x39b   : > { %v396_v39 = vadd.f32 %v394_v47, %v380_v1  ;;  %v427_v36 = vadd.f32 %v425_v6, %v411_v16  ;;  %995 = vrot.lane.b32.xlu0 %v1899_v42, %s1414_s28  ;;  %v458_v44 = vmul.f32 %v1154_v20, %v448_v35  ;;  %v472_v47 = vmul.f32 %v1155_v60, %v1618_v49  ;;  %v1159_v16 = vld [vmem:[#allocation3 + $0x12] ss:$0 sm:$0xff] }
 0x39c   : > { %v503_v6 = vmul.f32 %v1157_v37, %v1710_v24  ;;  %v520_v24 = vmul.f32 %v1158_v59, %v1766_v45  ;;  %v536_v43 = vmul.f32 %v1159_v16, %v1816_v31  ;;  %v582_v31 = vmul.f32 %v1162_v5, %v1626_v51 }
 0x39d   : > { %v443_v21 = vadd.f32 %v441_v17, %v427_v36  ;;  %v412_v14 = vadd.f32 %v410_v2, %v396_v39  ;;  %v1160_v39 = vld [vmem:[#allocation3 + $0x13] ss:$0 sm:$0xff]  ;;  %v535_v36 = vmul.f32 %v1159_v16, %v1810_v30  ;;  %v581_v30 = vmul.f32 %v1162_v5, %v1616_v48  ;;  %v1171_v5 = vld [vmem:[#allocation3 + $0x1e] ss:$0 sm:$0xff] }
 0x39e   : > { %v1905_v61 = vpop.permute.xlu1 %981  ;;  %v556_v49 = vpop.permute.xlu0 %555  ;;  %v551_v60 = vmul.f32 %v1160_v39, %v1857_v12 }
 0x39f   : > { %v459_v40 = vadd.f32 %v457_v38, %v443_v21  ;;  %v428_v23 = vadd.f32 %v426_v11, %v412_v14  ;;  %997 = vrot.lane.b32.xlu1 %v1905_v61, %s1414_s28  ;;  %v1161_v11 = vld [vmem:[#allocation3 + $0x14] ss:$0 sm:$0xff] }
 0x3a0   : > { %v567_v56 = vmul.f32 %v1161_v11, %v556_v49 }
 0x3a1   : > { %v473_v41 = vadd.f32 %v471_v22, %v459_v40  ;;  %v444_v15 = vadd.f32 %v442_v63, %v428_v23  ;;  %v1163_v63 = vld [vmem:[#allocation3 + $0x16] ss:$0 sm:$0xff]  ;;  %v552_v40 = vmul.f32 %v1160_v39, %v1863_v18  ;;  %v1168_v39 = vld [vmem:[#allocation3 + $0x1b] ss:$0 sm:$0xff] }
 0x3a2   : > { %v558_v25 = vpop.permute.xlu1 %557  ;;  %v597_v45 = vmul.f32 %v1163_v63, %v1668_v7  ;;  %v598_v48 = vmul.f32 %v1163_v63, %v1674_v8  ;;  %v666_v51 = vpop.permute.xlu0 %665  ;;  %v1169_v8 = vld [vmem:[#allocation3 + $0x1c] ss:$0 sm:$0xff] }
 0x3a3   : > { %v489_v1 = vadd.f32 %v487_v13, %v473_v41  ;;  %v460_v46 = vadd.f32 %v458_v44, %v444_v15  ;;  %v1164_v13 = vld [vmem:[#allocation3 + $0x17] ss:$0 sm:$0xff]  ;;  %v568_v15 = vmul.f32 %v1161_v11, %v558_v25  ;;  %v1165_v44 = vld [vmem:[#allocation3 + $0x18] ss:$0 sm:$0xff]  ;;  %v677_v11 = vmul.f32 %v1168_v39, %v666_v51 }
 0x3a4   : > { %v613_v59 = vmul.f32 %v1164_v13, %v1718_v26  ;;  %v629_v18 = vmul.f32 %v1165_v44, %v1768_v53  ;;  %v614_v7 = vmul.f32 %v1164_v13, %v1724_v27  ;;  %v630_v26 = vmul.f32 %v1165_v44, %v1774_v54  ;;  %v2086_v44 = vld [vmem:[#allocation34_spill] sm:$0xff] }
 0x3a5   : > { %v505_v2 = vadd.f32 %v503_v6, %v489_v1  ;;  %v474_v17 = vadd.f32 %v472_v47, %v460_v46  ;;  %v1166_v1 = vld [vmem:[#allocation3 + $0x19] ss:$0 sm:$0xff] }
 0x3a6   : > { %v646_v53 = vmul.f32 %v1166_v1, %v1824_v33  ;;  %v668_v27 = vpop.permute.xlu1 %667  ;;  %v692_v33 = vmul.f32 %v1169_v8, %v1632_v52  ;;  %v776_v52 = vpop.permute.xlu0 %775 }
 0x3a7   : > { %v490_v20 = vadd.f32 %v488_v57, %v474_v17  ;;  %v521_v35 = vadd.f32 %v519_v0, %v505_v2  ;;  %v1167_v57 = vld [vmem:[#allocation3 + $0x1a] ss:$0 sm:$0xff]  ;;  %v645_v0 = vmul.f32 %v1166_v1, %v1818_v32  ;;  %v691_v32 = vmul.f32 %v1169_v8, %v1624_v50 }
 0x3a8   : > { %v2091_v8 = vld [vmem:[#allocation13_spill] sm:$0xff] }
 0x3a9   : > { %v506_v21 = vadd.f32 %v504_v3, %v490_v20  ;;  %v537_v38 = vadd.f32 %v535_v36, %v521_v35  ;;  %v661_v3 = vmul.f32 %v1167_v57, %v1865_v58 }
 0x3ab   : > { %v553_v14 = vadd.f32 %v551_v60, %v537_v38  ;;  %v522_v22 = vadd.f32 %v520_v24, %v506_v21  ;;  %v1170_v24 = vld [vmem:[#allocation3 + $0x1d] ss:$0 sm:$0xff]  ;;  %v662_v60 = vmul.f32 %v1167_v57, %v1871_v62  ;;  %v2089_v57 = vld [vmem:[#allocation35_spill] sm:$0xff] }
 0x3ac   : > { %v707_v54 = vmul.f32 %v1170_v24, %v1676_v9  ;;  %v708_v50 = vmul.f32 %v1170_v24, %v1682_v10  ;;  %v724_v9 = vmul.f32 %v1171_v5, %v1732_v29  ;;  %v1176_v10 = vld [vmem:[#allocation3 + $0x23] ss:$0 sm:$0xff]  ;;  %v778_v29 = vpop.permute.xlu1 %777 }
 0x3ad   : > { %v569_v23 = vadd.f32 %v567_v56, %v553_v14  ;;  %v538_v37 = vadd.f32 %v536_v43, %v522_v22  ;;  %v678_v14 = vmul.f32 %v1168_v39, %v668_v27  ;;  %v1172_v56 = vld [vmem:[#allocation3 + $0x1f] ss:$0 sm:$0xff]  ;;  %v723_v22 = vmul.f32 %v1171_v5, %v1726_v28  ;;  %v2090_v39 = vld [vmem:[#allocation16_spill] sm:$0xff]  ;;  %v1180_v27 = vld [vmem:[#allocation3 + $0x27] ss:$0 sm:$0xff] }
 0x3ae   : > { %v739_v62 = vmul.f32 %v1172_v56, %v1776_v55 }
 0x3af   : > { %v583_v12 = vadd.f32 %v581_v30, %v569_v23  ;;  %v554_v41 = vadd.f32 %v552_v40, %v538_v37  ;;  %v1173_v30 = vld [vmem:[#allocation3 + $0x20] ss:$0 sm:$0xff]  ;;  %v1174_v37 = vld [vmem:[#allocation3 + $0x21] ss:$0 sm:$0xff] }
 0x3b0   : > { %v755_v13 = vmul.f32 %v1173_v30, %v1826_v34 }
 0x3b1   : > { %v599_v47 = vadd.f32 %v597_v45, %v583_v12  ;;  %v570_v6 = vadd.f32 %v568_v15, %v554_v41  ;;  %v1175_v41 = vld [vmem:[#allocation3 + $0x22] ss:$0 sm:$0xff]  ;;  %v2085_v15 = vld [vmem:[#allocation24_spill] sm:$0xff] }
 0x3b2   : > { %v740_v28 = vmul.f32 %v1172_v56, %v2085_v15  ;;  %v2096_v56 = vld [vmem:[#allocation30_spill] sm:$0xff]  ;;  %v1183_v15 = vld [vmem:[#allocation3 + $0x2a] ss:$0 sm:$0xff] }
 0x3b3   : > { %v615_v46 = vadd.f32 %v613_v59, %v599_v47  ;;  %v584_v16 = vadd.f32 %v582_v31, %v570_v6  ;;  %v771_v31 = vmul.f32 %v1174_v37, %v2086_v44  ;;  %v2087_v6 = vld [vmem:[#allocation29_spill] sm:$0xff] }
 0x3b4   : > { %v756_v55 = vmul.f32 %v1173_v30, %v2087_v6  ;;  %v1185_v6 = vld [vmem:[#allocation3 + $0x2c] ss:$0 sm:$0xff] }
 0x3b5   : > { %v600_v2 = vadd.f32 %v598_v48, %v584_v16  ;;  %v631_v17 = vadd.f32 %v629_v18, %v615_v46  ;;  %v787_v48 = vmul.f32 %v1175_v41, %v776_v52  ;;  %v1177_v46 = vld [vmem:[#allocation3 + $0x24] ss:$0 sm:$0xff]  ;;  %v2088_v16 = vld [vmem:[#allocation12_spill] sm:$0xff]  ;;  %v1182_v52 = vld [vmem:[#allocation3 + $0x29] ss:$0 sm:$0xff] }
 0x3b6   : > { %v801_v34 = vmul.f32 %v1176_v10, %v2088_v16  ;;  %v817_v51 = vmul.f32 %v1177_v46, %v2090_v39  ;;  %v2104_v39 = vld [vmem:[#allocation27_spill] sm:$0xff] }
 0x3b7   : > { %v616_v36 = vadd.f32 %v614_v7, %v600_v2  ;;  %v647_v20 = vadd.f32 %v645_v0, %v631_v17  ;;  %v772_v7 = vmul.f32 %v1174_v37, %v2089_v57  ;;  %v1178_v17 = vld [vmem:[#allocation3 + $0x25] ss:$0 sm:$0xff] }
 0x3b9   : > { %v663_v35 = vadd.f32 %v661_v3, %v647_v20  ;;  %v632_v49 = vadd.f32 %v630_v26, %v616_v36  ;;  %v788_v36 = vmul.f32 %v1175_v41, %v778_v29  ;;  %v1179_v20 = vld [vmem:[#allocation3 + $0x26] ss:$0 sm:$0xff]  ;;  %v2101_v29 = vld [vmem:[#allocation15_spill] sm:$0xff] }
 0x3ba   : > { %v912_v16 = vmul.f32 %v1183_v15, %v2101_v29 }
 0x3bb   : > { %v679_v21 = vadd.f32 %v677_v11, %v663_v35  ;;  %v648_v38 = vadd.f32 %v646_v53, %v632_v49  ;;  %v802_v53 = vmul.f32 %v1176_v10, %v2091_v8  ;;  %v2092_v35 = vld [vmem:[#allocation20_spill] sm:$0xff] }
 0x3bc   : > { %v833_v11 = vmul.f32 %v1178_v17, %v2092_v35 }
 0x3bd   : > { %v693_v58 = vadd.f32 %v691_v32, %v679_v21  ;;  %v664_v43 = vadd.f32 %v662_v60, %v648_v38  ;;  %v2093_v32 = vld [vmem:[#allocation17_spill] sm:$0xff] }
 0x3be   : > { %v818_v60 = vmul.f32 %v1177_v46, %v2093_v32  ;;  %v2094_v21 = vld [vmem:[#allocation25_spill] sm:$0xff]  ;;  %v1186_v46 = vld [vmem:[#allocation3 + $0x2d] ss:$0 sm:$0xff]  ;;  %v2107_v32 = vld [vmem:[#allocation28_spill] sm:$0xff] }
 0x3bf   : > { %v709_v63 = vadd.f32 %v707_v54, %v693_v58  ;;  %v680_v25 = vadd.f32 %v678_v14, %v664_v43  ;;  %v849_v38 = vmul.f32 %v1179_v20, %v2094_v21  ;;  %v1181_v58 = vld [vmem:[#allocation3 + $0x28] ss:$0 sm:$0xff]  ;;  %v2095_v43 = vld [vmem:[#allocation21_spill] sm:$0xff] }
 0x3c0   : > { %v834_v14 = vmul.f32 %v1178_v17, %v2095_v43 }
 0x3c1   : > { %v725_v40 = vadd.f32 %v723_v22, %v709_v63  ;;  %v694_v23 = vadd.f32 %v692_v33, %v680_v25  ;;  %v865_v33 = vmul.f32 %v1180_v27, %v2096_v56  ;;  %v2097_v25 = vld [vmem:[#allocation26_spill] sm:$0xff] }
 0x3c2   : > { %v850_v30 = vmul.f32 %v1179_v20, %v2097_v25  ;;  %v2105_v20 = vld [vmem:[#allocation23_spill] sm:$0xff] }
 0x3c3   : > { %v710_v45 = vadd.f32 %v708_v50, %v694_v23  ;;  %v741_v12 = vadd.f32 %v739_v62, %v725_v40  ;;  %v881_v50 = vmul.f32 %v1181_v58, %v1884_v19  ;;  %v2098_v23 = vld [vmem:[#allocation31_spill] sm:$0xff]  ;;  %v944_v8 = vmul.f32 %v1185_v6, %v2105_v20 }
 0x3c4   : > { %v866_v37 = vmul.f32 %v1180_v27, %v2098_v23 }
 0x3c5   : > { %v726_v59 = vadd.f32 %v724_v9, %v710_v45  ;;  %v757_v47 = vadd.f32 %v755_v13, %v741_v12  ;;  %v882_v45 = vmul.f32 %v1181_v58, %v1891_v4  ;;  %v2102_v4 = vld [vmem:[#allocation22_spill] sm:$0xff] }
 0x3c7   : > { %v773_v1 = vadd.f32 %v771_v31, %v757_v47  ;;  %v742_v18 = vadd.f32 %v740_v28, %v726_v59  ;;  %v1184_v31 = vld [vmem:[#allocation3 + $0x2b] ss:$0 sm:$0xff]  ;;  %v2099_v59 = vld [vmem:[#allocation14_spill] sm:$0xff] }
 0x3c8   : > { %v911_v47 = vmul.f32 %v1183_v15, %v2099_v59 }
 0x3c9   : > { %v789_v0 = vadd.f32 %v787_v48, %v773_v1  ;;  %v758_v2 = vadd.f32 %v756_v55, %v742_v18  ;;  %v2100_v55 = vld [vmem:[#allocation18_spill] sm:$0xff] }
 0x3ca   : > { %v927_v1 = vmul.f32 %v1184_v31, %v2100_v55 }
 0x3cb   : > { %v803_v26 = vadd.f32 %v801_v34, %v789_v0  ;;  %v774_v3 = vadd.f32 %v772_v7, %v758_v2  ;;  %v943_v34 = vmul.f32 %v1185_v6, %v2102_v4  ;;  %v1187_v0 = vld [vmem:[#allocation3 + $0x2e] ss:$0 sm:$0xff] }
 0x3cc   : > { %v2103_v2 = vld [vmem:[#allocation19_spill] sm:$0xff] }
 0x3cd   : > { %v819_v49 = vadd.f32 %v817_v51, %v803_v26  ;;  %v790_v24 = vadd.f32 %v788_v36, %v774_v3  ;;  %v928_v17 = vmul.f32 %v1184_v31, %v2103_v2  ;;  %v959_v51 = vmul.f32 %v1186_v46, %v2104_v39  ;;  %v1188_v36 = vld [vmem:[#allocation3 + $0x2f] ss:$0 sm:$0xff] }
 0x3ce   : > { %v991_v21 = vmul.f32 %v1188_v36, %v1899_v42 }
 0x3cf   : > { %v835_v5 = vadd.f32 %v833_v11, %v819_v49  ;;  %v804_v54 = vadd.f32 %v802_v53, %v790_v24  ;;  %v2106_v53 = vld [vmem:[#allocation32_spill] sm:$0xff]  ;;  %v1189_v24 = vld [vmem:[#allocation3 + $0x30] ss:$0 sm:$0xff] }
 0x3d0   : > { %v975_v35 = vmul.f32 %v1187_v0, %v2106_v53 }
 0x3d1   : > { %v820_v22 = vadd.f32 %v818_v60, %v804_v54  ;;  %v851_v63 = vadd.f32 %v849_v38, %v835_v5  ;;  %v960_v60 = vmul.f32 %v1186_v46, %v2107_v32  ;;  %v2108_v54 = vld [vmem:[#allocation33_spill] sm:$0xff] }
 0x3d2   : > { %v976_v58 = vmul.f32 %v1187_v0, %v2108_v54 }
 0x3d3   : > { %v836_v62 = vadd.f32 %v834_v14, %v820_v22  ;;  %v867_v40 = vadd.f32 %v865_v33, %v851_v63  ;;  %v992_v22 = vmul.f32 %v1188_v36, %v1905_v61 }
 0x3d5   : > { %v883_v9 = vadd.f32 %v881_v50, %v867_v40  ;;  %v852_v13 = vadd.f32 %v850_v30, %v836_v62 }
 0x3d7   : > { %v868_v12 = vadd.f32 %v866_v37, %v852_v13 }
 0x3d9   : > { %v884_v41 = vadd.f32 %v882_v45, %v868_v12 }
 0x405   : > { %v886_v28 = vpop.permute.xlu0 %885 }
 0x406   : > { %v897_v44 = vmul.f32 %v1182_v52, %v886_v28 }
 0x408   : > { %v899_v10 = vadd.f32 %v897_v44, %v883_v9 }
 0x409   : > { %v888_v19 = vpop.permute.xlu1 %887 }
 0x40a   : > { %v913_v48 = vadd.f32 %v911_v47, %v899_v10  ;;  %v898_v18 = vmul.f32 %v1182_v52, %v888_v19 }
 0x40c   : > { %v929_v57 = vadd.f32 %v927_v1, %v913_v48  ;;  %v900_v7 = vadd.f32 %v898_v18, %v884_v41 }
 0x40d   : > { %v996_v27 = vpop.permute.xlu0 %995 }
 0x40e   : > { %v945_v26 = vadd.f32 %v943_v34, %v929_v57  ;;  %v914_v3 = vadd.f32 %v912_v16, %v900_v7  ;;  %v1007_v14 = vmul.f32 %v1189_v24, %v996_v27 }
 0x410   : > { %v930_v11 = vadd.f32 %v928_v17, %v914_v3  ;;  %v961_v49 = vadd.f32 %v959_v51, %v945_v26 }
 0x411   : > { %v998_v33 = vpop.permute.xlu1 %997 }
 0x412   : > { %v946_v38 = vadd.f32 %v944_v8, %v930_v11  ;;  %v977_v5 = vadd.f32 %v975_v35, %v961_v49  ;;  %v1008_v50 = vmul.f32 %v1189_v24, %v998_v33 }
 0x414   : > { %v993_v43 = vadd.f32 %v991_v21, %v977_v5  ;;  %v962_v56 = vadd.f32 %v960_v60, %v946_v38 }
 0x416   : > { %v1009_v63 = vadd.f32 %v1007_v14, %v993_v43  ;;  %v978_v25 = vadd.f32 %v976_v58, %v962_v56 }
 0x418   : > { %v994_v30 = vadd.f32 %v992_v22, %v978_v25  ;;  %1011 = vrot.lane.b32.xlu0 %v1009_v63, %s1415_s22 }
 0x41a   : > { %v1010_v62 = vadd.f32 %v1008_v50, %v994_v30 }
 0x41c   : > { %1013 = vrot.lane.b32.xlu1 %v1010_v62, %s1415_s22 }
 0x48a   : > { %v1012_v42 = vpop.permute.xlu0 %1011 }
 0x48b   : > { %v1015_v40 = vadd.f32 %v1012_v42, %v1009_v63 }
 0x48d   : > { %v1190_v23 = vmul.f32 -1.442695, %v1015_v40 }
 0x48e   : > { %v1014_v37 = vpop.permute.xlu1 %1013 }
 0x48f   : > { %1267 = vpow2.f32 %v1190_v23  ;;  %v1016_v9 = vadd.f32 %v1014_v37, %v1010_v62 }
 0x491   : > { %v1191_v13 = vmul.f32 -1.442695, %v1016_v9 }
 0x493   : > { %1269 = vpow2.f32 %v1191_v13 }
 0x499   : > { %v1268_v45 = vpop.eup %1267 }
 0x49a   : > { %v1023_v61 = vadd.f32 1.0, %v1268_v45 }
 0x49c   : > { %1271 = vrcp.f32 %v1023_v61 }
 0x49d   : > { %v1270_v12 = vpop.eup %1269 }
 0x49e   : > { %v1024_v41 = vadd.f32 1.0, %v1270_v12 }
 0x4a0   : > { %1273 = vrcp.f32 %v1024_v41 }
 0x4a6   : > { %v1272_v52 = vpop.eup %1271 }
 0x4a7   : > { %1029 = vst [vmem:[%s176_s5] sm:$0xff] %v1272_v52 }
 0x4aa   : > { %v1274_v15 = vpop.eup %1273 }
 0x4ab   : > { %1030 = vst [vmem:[%s176_s5 + $0x8] sm:$0xff] %v1274_v15 }
 0x4ac   : > { %1346 = shalt.err (!%p1343_p12)
}
 0x4ad   : > { %s1347_s30 = scalar_lea.hbm %s1975_s24, 256  ;;  %s1351_s15 = scalar_lea.hbm %s2023_s2, 512 }
 0x4ae   : > { %p1348_p2 = scmp.ne.s32.totalorder %s1975_s24, %s1347_s30  ;;  %p1352_p9 = scmp.lt.u32.totalorder %s1975_s24, %s2023_s2 }
 0x4af   : > { %p1353_p0 = scmp.lt.u32.totalorder %s1351_s15, %s1347_s30  ;;  %p1355_p8 = scmp.lt.u32.totalorder %s1347_s30, %s1975_s24 }
 0x4b0   : > { %p1349_p1 = pnand %p1348_p2, %p2109_p5 }
 0x4b1   : > { %p1354_p4 = por %p1353_p0, %p1352_p9 }
 0x4b2   : > { %p1350_p6 = pneg %p1349_p1 }
 0x4b3   : > { %p1356_p11 = por %p1355_p8, %p1354_p4 }
 0x4b5   : > { %p1357_p10 = pnand %p1356_p11, %p1350_p6 }
 0x4b7   : > { %1360 = shalt.err (!%p1357_p10)
}
 0x4b8   : > { %s1417_s22 = smov 128   ;;  %s1418_s23 = smov 8  }
 0x4b9   : > { %1205 = dma.vmem_to_hbm [thread:$0]  (%p2109_p5), %s1977_s6, 256, %s1975_s24, %s1032_s25, %s1417_s22, %s1417_s22, %s1418_s23  }
 0x4ba PF: > { %s1060_s29 = sand.u32 1, %s1391_s9   ;;  %p2110_p13 = scmp.ne.s32.totalorder %s2052_s16, 0 }
 0x4bb   : > { %p2111_p3 = scmp.ge.s32.totalorder %s1403_s12, 2  ;;  %s1061_s5 = scalar_lea.sflag [#allocation5], %s1060_s29 }
 0x4bd   : > { %p1216_p7 = pnand %p2111_p3, %p2110_p13 }
 0x4bf   : > { %1386 = dma.done.wait (!%p1216_p7), %s1061_s5, 256  }
 0x4c0   : > { %1388 = vsyncadd (!%p1216_p7), %s1061_s5, 4294967040  ;;  %p16_p12 = scmp.ge.s32.totalorder %s1490_s21, 4   ;;  %s2112_s9 = smov %s1395_s10 }
 0x4c1   : > { %s2113_s10 = smov %s1399_s11  ;;  %s2114_s11 = smov %s1522_s14 }
 0x4c2   : > { %s2115_s12 = smov %s1490_s21  ;;  %18 = sbr.rel (!%p16_p12) target bundleno = 6 (0x6), region = 126 }
 0x4c9   :  { %1066 = vsyncpa [#allocation4], 1 }
 0x4ca   :  { %1068 = vsyncpa [#allocation4 + $0x1], 1 }
 0x4cb   :  { %1069 = vsyncpa [#allocation7], 1 }
 0x4cc   :  { %1071 = vsyncpa [#allocation7 + $0x1], 1 }
 0x4cd   :  { %1072 = vsyncpa [#allocation5], 1 }
 0x4ce   :  { %1074 = vsyncpa [#allocation5 + $0x1], 1 }

</bundles_post_ra>
